<compile_context>
chip_gen: v7x
topology: tpu7x:2x2x1
jax: 0.10.0
libtpu: 0.0.40
codegen_flags: <defaults>
</compile_context>

<pallas_src>
import functools
import numpy as np
import jax
import jax.numpy as jnp
from jax.experimental import pallas as pl
from jax.experimental.pallas import tpu as pltpu


_COMPUTE_DTYPE = jnp.bfloat16   # MXU operand dtype; accumulation stays f32.


def _gelu(x):
    # tanh-form GELU: 1 EUP tanh + a few VPU ops (frees VALU, esp. on v5e).
    c = np.float32(0.7978845608028654)                     # sqrt(2/pi)
    return 0.5 * x * (1.0 + jnp.tanh(c * (x + np.float32(0.044715) * x * x * x)))


def _layernorm(z, g, b, eps):
    # PyTorch LayerNorm semantics: biased variance, eps inside rsqrt.
    mu = jnp.mean(z, axis=-1, keepdims=True)
    var = jnp.mean(jnp.square(z - mu), axis=-1, keepdims=True)
    return (z - mu) * jax.lax.rsqrt(var + eps) * g + b


# ------------------------------ fused kernel ---------------------------------

def _fwd_kernel(tok_ref, emb_w_ref, emb_b_ref,
                wqkv_ref, bqkv_ref, wo_ref, bo_ref,
                g1_ref, be1_ref, w1_ref, b1_ref, w2_ref, b2_ref,
                g2_ref, be2_ref,
                gf_ref, bf_ref, pw2_ref, mask_ref, sel_ref, pb_ref,
                o_ref, h_ref,
                *, N, H, dh, C, eps):
    D = H * dh
    f32 = jnp.float32
    cdt = _COMPUTE_DTYPE
    layer = pl.program_id(1)
    n_layers = pl.num_programs(1)

    # --- DataEmbedding_inverted: Linear(seq_len -> d_model), once per batch ---
    @pl.when(layer == 0)
    def _():
        h_ref[...] = (jnp.dot(tok_ref[...], emb_w_ref[...],
                              preferred_element_type=f32) + emb_b_ref[...])

    h = h_ref[...]                                         # [N, D] f32 residual

    # --- encoder layer `layer` (weights streamed for this grid step) ---------
    # Fused Q|K|V projection; 1/sqrt(d_head) is pre-folded into the Q columns.
    qkv = (jnp.dot(h.astype(cdt), wqkv_ref[...],
                   preferred_element_type=f32) + bqkv_ref[...])       # [N, 3D]

    heads = []
    for hd in range(H):            # short static head loop, results stay in vregs
        c0 = hd * dh
        q = qkv[:, c0:c0 + dh].astype(cdt)
        k = qkv[:, D + c0:D + c0 + dh].astype(cdt)
        v = qkv[:, 2 * D + c0:2 * D + c0 + dh].astype(cdt)
        s = jax.lax.dot_general(q, k, (((1,), (1,)), ((), ())),
                                preferred_element_type=f32)           # [N, N]
        m = jnp.max(s, axis=-1, keepdims=True)
        p = jnp.exp(s - m)
        p = p / jnp.sum(p, axis=-1, keepdims=True)         # exact divide
        heads.append(jnp.dot(p.astype(cdt), v, preferred_element_type=f32))
    # Lane-dense reassembly (no scratch round trip / masked partial stores).
    attn = jnp.concatenate(heads, axis=-1)                 # [N, D] f32

    attn = (jnp.dot(attn.astype(cdt), wo_ref[...],
                    preferred_element_type=f32) + bo_ref[...])
    x1 = _layernorm(h + attn, g1_ref[...], be1_ref[...], eps)

    y = (jnp.dot(x1.astype(cdt), w1_ref[...],
                 preferred_element_type=f32) + b1_ref[...])           # Conv1d k=1
    y = _gelu(y)
    y = (jnp.dot(y.astype(cdt), w2_ref[...],
                 preferred_element_type=f32) + b2_ref[...])           # Conv1d k=1
    h_new = _layernorm(x1 + y, g2_ref[...], be2_ref[...], eps)
    h_ref[...] = h_new                                     # carried to next step

    # --- final LayerNorm + GELU + flatten/Linear head, once per batch --------
    @pl.when(layer == n_layers - 1)
    def _():
        hf = _gelu(_layernorm(h_new, gf_ref[...], bf_ref[...], eps))  # [N, D]
        # One MXU pass against [D, N*C]; keep row n's column block n (0/1 mask
        # built host-side), fold the N blocks with a 0/1 selector matmul, and
        # reduce over the N rows -> logits for this batch element.
        allp = jnp.dot(hf.astype(cdt), pw2_ref[...],
                       preferred_element_type=f32)                    # [N, N*C]
        masked = allp * mask_ref[...]
        per_row = jnp.dot(masked, sel_ref[...],
                          preferred_element_type=f32)                 # [N, C]
        o_ref[...] = jnp.sum(per_row, axis=0, keepdims=True) + pb_ref[...]


# ------------------------- parameters (deterministic) ------------------------

def init_params(key, cfg):
    S, D, F, L = cfg["seq_len"], cfg["d_model"], cfg["d_ff"], cfg["e_layers"]
    N, C, H = cfg["enc_in"], cfg["num_class"], cfg["n_heads"]
    assert D % H == 0
    dh = D // H
    scale = np.float32(1.0 / np.sqrt(dh))                  # FullAttention default
    wdt = _COMPUTE_DTYPE                                   # bf16 weight storage

    def lin(k, fan_in, fan_out):
        k1, k2 = jax.random.split(k)
        lim = 1.0 / np.sqrt(fan_in)
        w = jax.random.uniform(k1, (fan_in, fan_out), jnp.float32, -lim, lim)
        b = jax.random.uniform(k2, (fan_out,), jnp.float32, -lim, lim)
        return w, b

    keys = jax.random.split(key, L + 2)
    p = {}
    ew, eb = lin(keys[0], S, D)                            # Linear(seq_len, d_model)
    p["emb_w"], p["emb_b"] = ew.astype(wdt), eb

    wqkv, bqkv, wo, bo, w1, b1, w2, b2 = [], [], [], [], [], [], [], []
    for l in range(L):
        lk = jax.random.split(keys[1 + l], 6)
        wq, bq = lin(lk[0], D, D)
        wk, bk = lin(lk[1], D, D)
        wv, bv = lin(lk[2], D, D)
        # fold the 1/sqrt(d_head) attention scale into Q (weights AND bias)
        wqkv.append(jnp.concatenate([wq * scale, wk, wv], axis=1))    # [D, 3D]
        bqkv.append(jnp.concatenate([bq * scale, bk, bv], axis=0))    # [3D]
        wol, bol = lin(lk[3], D, D); wo.append(wol); bo.append(bol)
        w1l, b1l = lin(lk[4], D, F); w1.append(w1l); b1.append(b1l)   # Conv1d k=1
        w2l, b2l = lin(lk[5], F, D); w2.append(w2l); b2.append(b2l)   # Conv1d k=1

    p["wqkv"] = jnp.stack(wqkv).astype(wdt); p["bqkv"] = jnp.stack(bqkv)
    p["wo"] = jnp.stack(wo).astype(wdt);     p["bo"] = jnp.stack(bo)
    p["w1"] = jnp.stack(w1).astype(wdt);     p["b1"] = jnp.stack(b1)
    p["w2"] = jnp.stack(w2).astype(wdt);     p["b2"] = jnp.stack(b2)
    p["g1"] = jnp.ones((L, D), jnp.float32); p["be1"] = jnp.zeros((L, D), jnp.float32)
    p["g2"] = jnp.ones((L, D), jnp.float32); p["be2"] = jnp.zeros((L, D), jnp.float32)
    p["gf"] = jnp.ones((D,), jnp.float32);   p["bf"] = jnp.zeros((D,), jnp.float32)
    # nn.Linear(d_model*enc_in, num_class) weight re-laid-out to [D, N*C] so the
    # whole flatten+Linear head is a single lane-dense MXU pass in the kernel.
    pw, pb = lin(keys[L + 1], D * N, C)
    p["pw2"] = pw.reshape(N, D, C).transpose(1, 0, 2).reshape(D, N * C).astype(wdt)
    p["pb"] = pb
    return p


# --------------------------------- forward -----------------------------------

def forward(params, x_enc, cfg):
    B, S, N = x_enc.shape
    D, H, L = cfg["d_model"], cfg["n_heads"], cfg["e_layers"]
    F, C = cfg["d_ff"], cfg["num_class"]
    dh = D // H

    # inverted tokens: [B, S, N] -> [B, N, S] (layout plumbing kept in XLA)
    tokens = jnp.transpose(x_enc, (0, 2, 1)).astype(_COMPUTE_DTYPE)

    # Host-built 0/1 constants for the flatten+Linear head (no in-kernel
    # integer div/mod): keep row n's column block n, then fold the N blocks.
    head_mask = np.zeros((N, N * C), np.float32)
    for n in range(N):
        head_mask[n, n * C:(n + 1) * C] = 1.0
    head_sel = np.tile(np.eye(C, dtype=np.float32), (N, 1))           # [N*C, C]

    args = (
        tokens,                                                        # [B, N, S]
        params["emb_w"], params["emb_b"].reshape(1, D),
        params["wqkv"], params["bqkv"].reshape(L, 1, 3 * D),
        params["wo"], params["bo"].reshape(L, 1, D),
        params["g1"].reshape(L, 1, D), params["be1"].reshape(L, 1, D),
        params["w1"], params["b1"].reshape(L, 1, F),
        params["w2"], params["b2"].reshape(L, 1, D),
        params["g2"].reshape(L, 1, D), params["be2"].reshape(L, 1, D),
        params["gf"].reshape(1, D), params["bf"].reshape(1, D),
        params["pw2"], jnp.asarray(head_mask), jnp.asarray(head_sel),
        params["pb"].reshape(1, C),
    )

    def const_spec(shape):           # resident across the whole grid
        n = len(shape)
        return pl.BlockSpec(shape, lambda b, l: (0,) * n)

    def layer_spec(shape):           # stream one layer's slab per grid step
        return pl.BlockSpec((None,) + tuple(shape[1:]), lambda b, l: (l, 0, 0))

    in_specs = [
        pl.BlockSpec((None, N, S), lambda b, l: (b, 0, 0)),            # tokens
        const_spec((S, D)), const_spec((1, D)),                        # embedding
        layer_spec((L, D, 3 * D)), layer_spec((L, 1, 3 * D)),          # fused QKV
        layer_spec((L, D, D)), layer_spec((L, 1, D)),                  # out proj
        layer_spec((L, 1, D)), layer_spec((L, 1, D)),                  # norm1
        layer_spec((L, D, F)), layer_spec((L, 1, F)),                  # FFN in
        layer_spec((L, F, D)), layer_spec((L, 1, D)),                  # FFN out
        layer_spec((L, 1, D)), layer_spec((L, 1, D)),                  # norm2
        const_spec((1, D)), const_spec((1, D)),                        # final LN
        const_spec((D, N * C)), const_spec((N, N * C)),                # head
        const_spec((N * C, C)), const_spec((1, C)),
    ]

    # VMEM budget: constants + ~2 streamed layers (double-buffered) + scratch.
    arg_bytes = sum(int(a.size) * a.dtype.itemsize for a in args)
    vmem_bytes = int(min(max(2 * arg_bytes + (4 << 20), 16 << 20), 64 << 20))

    kernel = functools.partial(_fwd_kernel, N=N, H=H, dh=dh, C=C, eps=1e-5)
    out = pl.pallas_call(
        kernel,
        out_shape=jax.ShapeDtypeStruct((B, 1, C), jnp.float32),
        grid=(B, L),
        in_specs=in_specs,
        out_specs=pl.BlockSpec((None, 1, C), lambda b, l: (b, 0, 0)),
        scratch_shapes=[pltpu.VMEM((N, D), jnp.float32)],              # residual h
        compiler_params=pltpu.CompilerParams(
            dimension_semantics=("parallel", "arbitrary"),
            vmem_limit_bytes=vmem_bytes),
    )(*args)
    return out.reshape(B, C)


# ---------------------------------- main --------------------------------------

if __name__ == "__main__":
    cfg = dict(seq_len=16, enc_in=4, d_model=32, n_heads=4, d_ff=64,
               e_layers=2, num_class=3)
    key = jax.random.PRNGKey(0)
    pkey, xkey = jax.random.split(key)
    params = init_params(pkey, cfg)
    x_enc = jax.random.normal(xkey, (2, cfg["seq_len"], cfg["enc_in"]), jnp.float32)
    out = forward(params, x_enc, cfg)
    jax.block_until_ready(out)
    assert out.shape == (2, cfg["num_class"]) and out.dtype == jnp.float32
    print("KERNEL_OK")
</pallas_src>

<mosaic_0001>
module attributes {stable_mosaic.version = 11 : i64} {
  func.func @_fwd_kernel(%arg0: i32, %arg1: i32, %arg2: memref<1x4x16xbf16, #tpu.memory_space<vmem>>, %arg3: memref<16x32xbf16, #tpu.memory_space<vmem>>, %arg4: memref<1x32xf32, #tpu.memory_space<vmem>>, %arg5: memref<1x32x96xbf16, #tpu.memory_space<vmem>>, %arg6: memref<1x1x96xf32, #tpu.memory_space<vmem>>, %arg7: memref<1x32x32xbf16, #tpu.memory_space<vmem>>, %arg8: memref<1x1x32xf32, #tpu.memory_space<vmem>>, %arg9: memref<1x1x32xf32, #tpu.memory_space<vmem>>, %arg10: memref<1x1x32xf32, #tpu.memory_space<vmem>>, %arg11: memref<1x32x64xbf16, #tpu.memory_space<vmem>>, %arg12: memref<1x1x64xf32, #tpu.memory_space<vmem>>, %arg13: memref<1x64x32xbf16, #tpu.memory_space<vmem>>, %arg14: memref<1x1x32xf32, #tpu.memory_space<vmem>>, %arg15: memref<1x1x32xf32, #tpu.memory_space<vmem>>, %arg16: memref<1x1x32xf32, #tpu.memory_space<vmem>>, %arg17: memref<1x32xf32, #tpu.memory_space<vmem>>, %arg18: memref<1x32xf32, #tpu.memory_space<vmem>>, %arg19: memref<32x12xbf16, #tpu.memory_space<vmem>>, %arg20: memref<4x12xf32, #tpu.memory_space<vmem>>, %arg21: memref<12x3xf32, #tpu.memory_space<vmem>>, %arg22: memref<1x3xf32, #tpu.memory_space<vmem>>, %arg23: memref<1x1x3xf32, #tpu.memory_space<vmem>>, %arg24: memref<4x32xf32, #tpu.memory_space<vmem>>) attributes {dimension_semantics = [#tpu.dimension_semantics<parallel>, #tpu.dimension_semantics<arbitrary>], iteration_bounds = array<i64: 2, 2>, scalar_prefetch = 0 : i64, scratch_operands = 1 : i64, tpu.core_type = #tpu.core_type<tc>, window_params = [{transform_indices = @transform_0, window_bounds = array<i64: 1, 4, 16>}, {pipeline_mode = #tpu.pipeline_mode<synchronous>, transform_indices = @transform_1, window_bounds = array<i64: 16, 32>}, {pipeline_mode = #tpu.pipeline_mode<synchronous>, transform_indices = @transform_2, window_bounds = array<i64: 1, 32>}, {transform_indices = @transform_3, window_bounds = array<i64: 1, 32, 96>}, {transform_indices = @transform_4, window_bounds = array<i64: 1, 1, 96>}, {transform_indices = @transform_5, window_bounds = array<i64: 1, 32, 32>}, {transform_indices = @transform_6, window_bounds = array<i64: 1, 1, 32>}, {transform_indices = @transform_7, window_bounds = array<i64: 1, 1, 32>}, {transform_indices = @transform_8, window_bounds = array<i64: 1, 1, 32>}, {transform_indices = @transform_9, window_bounds = array<i64: 1, 32, 64>}, {transform_indices = @transform_10, window_bounds = array<i64: 1, 1, 64>}, {transform_indices = @transform_11, window_bounds = array<i64: 1, 64, 32>}, {transform_indices = @transform_12, window_bounds = array<i64: 1, 1, 32>}, {transform_indices = @transform_13, window_bounds = array<i64: 1, 1, 32>}, {transform_indices = @transform_14, window_bounds = array<i64: 1, 1, 32>}, {pipeline_mode = #tpu.pipeline_mode<synchronous>, transform_indices = @transform_15, window_bounds = array<i64: 1, 32>}, {pipeline_mode = #tpu.pipeline_mode<synchronous>, transform_indices = @transform_16, window_bounds = array<i64: 1, 32>}, {pipeline_mode = #tpu.pipeline_mode<synchronous>, transform_indices = @transform_17, window_bounds = array<i64: 32, 12>}, {pipeline_mode = #tpu.pipeline_mode<synchronous>, transform_indices = @transform_18, window_bounds = array<i64: 4, 12>}, {pipeline_mode = #tpu.pipeline_mode<synchronous>, transform_indices = @transform_19, window_bounds = array<i64: 12, 3>}, {pipeline_mode = #tpu.pipeline_mode<synchronous>, transform_indices = @transform_20, window_bounds = array<i64: 1, 3>}, {transform_indices = @transform_21, window_bounds = array<i64: 1, 1, 3>}]} {
    %c0_i32 = arith.constant 0 : i32
    %0 = arith.cmpi eq, %arg1, %c0_i32 : i32
    %1 = arith.extui %0 : i1 to i32
    %c0_i32_0 = arith.constant 0 : i32
    %2 = arith.cmpi ne, %1, %c0_i32_0 : i32
    scf.if %2 {
      %c0_74 = arith.constant 0 : index
      %c0_75 = arith.constant 0 : index
      %c0_76 = arith.constant 0 : index
      %180 = vector.load %arg2[%c0_74, %c0_75, %c0_76] : memref<1x4x16xbf16, #tpu.memory_space<vmem>>, vector<1x4x16xbf16>
      %181 = vector.shape_cast %180 : vector<1x4x16xbf16> to vector<4x16xbf16>
      %c0_77 = arith.constant 0 : index
      %c0_78 = arith.constant 0 : index
      %182 = vector.load %arg3[%c0_77, %c0_78] : memref<16x32xbf16, #tpu.memory_space<vmem>>, vector<16x32xbf16>
      %cst_79 = arith.constant dense<0.000000e+00> : vector<4x32xf32>
      %183 = tpu.matmul %181, %182, %cst_79 {dimension_numbers = #tpu.dot_dimension_numbers<[1], [0], [0], [1], [0, 0, 1, 1], [], []>} : vector<4x16xbf16>, vector<16x32xbf16>, vector<4x32xf32> -> vector<4x32xf32>
      %c0_80 = arith.constant 0 : index
      %c0_81 = arith.constant 0 : index
      %184 = vector.load %arg4[%c0_80, %c0_81] : memref<1x32xf32, #tpu.memory_space<vmem>>, vector<1x32xf32>
      %185 = vector.broadcast %184 : vector<1x32xf32> to vector<4x32xf32>
      %186 = arith.addf %183, %185 : vector<4x32xf32>
      %c0_82 = arith.constant 0 : index
      %c0_83 = arith.constant 0 : index
      %187 = vector.load %arg24[%c0_82, %c0_83] : memref<4x32xf32, #tpu.memory_space<vmem>>, vector<4x32xf32>
      tpu.vector_store %arg24[%c0_82, %c0_83], %186 {strides = array<i32>} : memref<4x32xf32, #tpu.memory_space<vmem>>, vector<4x32xf32>,
    } else {
    }
    %c0 = arith.constant 0 : index
    %c0_1 = arith.constant 0 : index
    %3 = vector.load %arg24[%c0, %c0_1] : memref<4x32xf32, #tpu.memory_space<vmem>>, vector<4x32xf32>
    %4 = arith.truncf %3 : vector<4x32xf32> to vector<4x32xbf16>
    %c0_2 = arith.constant 0 : index
    %c0_3 = arith.constant 0 : index
    %c0_4 = arith.constant 0 : index
    %5 = vector.load %arg5[%c0_2, %c0_3, %c0_4] : memref<1x32x96xbf16, #tpu.memory_space<vmem>>, vector<1x32x96xbf16>
    %6 = vector.shape_cast %5 : vector<1x32x96xbf16> to vector<32x96xbf16>
    %cst = arith.constant dense<0.000000e+00> : vector<4x96xf32>
    %7 = tpu.matmul %4, %6, %cst {dimension_numbers = #tpu.dot_dimension_numbers<[1], [0], [0], [1], [0, 0, 1, 1], [], []>} : vector<4x32xbf16>, vector<32x96xbf16>, vector<4x96xf32> -> vector<4x96xf32>
    %c0_5 = arith.constant 0 : index
    %c0_6 = arith.constant 0 : index
    %c0_7 = arith.constant 0 : index
    %8 = vector.load %arg6[%c0_5, %c0_6, %c0_7] : memref<1x1x96xf32, #tpu.memory_space<vmem>>, vector<1x1x96xf32>
    %9 = vector.shape_cast %8 : vector<1x1x96xf32> to vector<1x96xf32>
    %10 = vector.broadcast %9 : vector<1x96xf32> to vector<4x96xf32>
    %11 = arith.addf %7, %10 : vector<4x96xf32>
    %12 = vector.extract_strided_slice %11 {offsets = [0, 0], sizes = [4, 8], strides = [1, 1]} : vector<4x96xf32> to vector<4x8xf32>
    %13 = arith.truncf %12 : vector<4x8xf32> to vector<4x8xbf16>
    %14 = vector.extract_strided_slice %11 {offsets = [0, 32], sizes = [4, 8], strides = [1, 1]} : vector<4x96xf32> to vector<4x8xf32>
    %15 = arith.truncf %14 : vector<4x8xf32> to vector<4x8xbf16>
    %16 = vector.extract_strided_slice %11 {offsets = [0, 64], sizes = [4, 8], strides = [1, 1]} : vector<4x96xf32> to vector<4x8xf32>
    %17 = arith.truncf %16 : vector<4x8xf32> to vector<4x8xbf16>
    %cst_8 = arith.constant dense<0.000000e+00> : vector<4x4xf32>
    %18 = tpu.matmul %13, %15, %cst_8 {dimension_numbers = #tpu.dot_dimension_numbers<[1], [1], [0], [0], [0, 0, 1, 0], [], []>} : vector<4x8xbf16>, vector<4x8xbf16>, vector<4x4xf32> -> vector<4x4xf32>
    %cst_9 = arith.constant dense<0xFF800000> : vector<4xf32>
    %19 = vector.multi_reduction <maximumf>, %18, %cst_9 [1] : vector<4x4xf32> to vector<4xf32>
    %20 = vector.shape_cast %19 : vector<4xf32> to vector<4x1xf32>
    %21 = vector.broadcast %20 : vector<4x1xf32> to vector<4x4xf32>
    %22 = arith.subf %18, %21 : vector<4x4xf32>
    %23 = math.exp %22 : vector<4x4xf32>
    %cst_10 = arith.constant dense<0.000000e+00> : vector<4xf32>
    %24 = vector.multi_reduction <add>, %23, %cst_10 [1] : vector<4x4xf32> to vector<4xf32>
    %25 = vector.shape_cast %24 : vector<4xf32> to vector<4x1xf32>
    %26 = vector.broadcast %25 : vector<4x1xf32> to vector<4x4xf32>
    %27 = arith.divf %23, %26 : vector<4x4xf32>
    %28 = arith.truncf %27 : vector<4x4xf32> to vector<4x4xbf16>
    %cst_11 = arith.constant dense<0.000000e+00> : vector<4x8xf32>
    %29 = tpu.matmul %28, %17, %cst_11 {dimension_numbers = #tpu.dot_dimension_numbers<[1], [0], [0], [1], [0, 0, 1, 1], [], []>} : vector<4x4xbf16>, vector<4x8xbf16>, vector<4x8xf32> -> vector<4x8xf32>
    %30 = vector.extract_strided_slice %11 {offsets = [0, 8], sizes = [4, 8], strides = [1, 1]} : vector<4x96xf32> to vector<4x8xf32>
    %31 = arith.truncf %30 : vector<4x8xf32> to vector<4x8xbf16>
    %32 = vector.extract_strided_slice %11 {offsets = [0, 40], sizes = [4, 8], strides = [1, 1]} : vector<4x96xf32> to vector<4x8xf32>
    %33 = arith.truncf %32 : vector<4x8xf32> to vector<4x8xbf16>
    %34 = vector.extract_strided_slice %11 {offsets = [0, 72], sizes = [4, 8], strides = [1, 1]} : vector<4x96xf32> to vector<4x8xf32>
    %35 = arith.truncf %34 : vector<4x8xf32> to vector<4x8xbf16>
    %cst_12 = arith.constant dense<0.000000e+00> : vector<4x4xf32>
    %36 = tpu.matmul %31, %33, %cst_12 {dimension_numbers = #tpu.dot_dimension_numbers<[1], [1], [0], [0], [0, 0, 1, 0], [], []>} : vector<4x8xbf16>, vector<4x8xbf16>, vector<4x4xf32> -> vector<4x4xf32>
    %cst_13 = arith.constant dense<0xFF800000> : vector<4xf32>
    %37 = vector.multi_reduction <maximumf>, %36, %cst_13 [1] : vector<4x4xf32> to vector<4xf32>
    %38 = vector.shape_cast %37 : vector<4xf32> to vector<4x1xf32>
    %39 = vector.broadcast %38 : vector<4x1xf32> to vector<4x4xf32>
    %40 = arith.subf %36, %39 : vector<4x4xf32>
    %41 = math.exp %40 : vector<4x4xf32>
    %cst_14 = arith.constant dense<0.000000e+00> : vector<4xf32>
    %42 = vector.multi_reduction <add>, %41, %cst_14 [1] : vector<4x4xf32> to vector<4xf32>
    %43 = vector.shape_cast %42 : vector<4xf32> to vector<4x1xf32>
    %44 = vector.broadcast %43 : vector<4x1xf32> to vector<4x4xf32>
    %45 = arith.divf %41, %44 : vector<4x4xf32>
    %46 = arith.truncf %45 : vector<4x4xf32> to vector<4x4xbf16>
    %cst_15 = arith.constant dense<0.000000e+00> : vector<4x8xf32>
    %47 = tpu.matmul %46, %35, %cst_15 {dimension_numbers = #tpu.dot_dimension_numbers<[1], [0], [0], [1], [0, 0, 1, 1], [], []>} : vector<4x4xbf16>, vector<4x8xbf16>, vector<4x8xf32> -> vector<4x8xf32>
    %48 = vector.extract_strided_slice %11 {offsets = [0, 16], sizes = [4, 8], strides = [1, 1]} : vector<4x96xf32> to vector<4x8xf32>
    %49 = arith.truncf %48 : vector<4x8xf32> to vector<4x8xbf16>
    %50 = vector.extract_strided_slice %11 {offsets = [0, 48], sizes = [4, 8], strides = [1, 1]} : vector<4x96xf32> to vector<4x8xf32>
    %51 = arith.truncf %50 : vector<4x8xf32> to vector<4x8xbf16>
    %52 = vector.extract_strided_slice %11 {offsets = [0, 80], sizes = [4, 8], strides = [1, 1]} : vector<4x96xf32> to vector<4x8xf32>
    %53 = arith.truncf %52 : vector<4x8xf32> to vector<4x8xbf16>
    %cst_16 = arith.constant dense<0.000000e+00> : vector<4x4xf32>
    %54 = tpu.matmul %49, %51, %cst_16 {dimension_numbers = #tpu.dot_dimension_numbers<[1], [1], [0], [0], [0, 0, 1, 0], [], []>} : vector<4x8xbf16>, vector<4x8xbf16>, vector<4x4xf32> -> vector<4x4xf32>
    %cst_17 = arith.constant dense<0xFF800000> : vector<4xf32>
    %55 = vector.multi_reduction <maximumf>, %54, %cst_17 [1] : vector<4x4xf32> to vector<4xf32>
    %56 = vector.shape_cast %55 : vector<4xf32> to vector<4x1xf32>
    %57 = vector.broadcast %56 : vector<4x1xf32> to vector<4x4xf32>
    %58 = arith.subf %54, %57 : vector<4x4xf32>
    %59 = math.exp %58 : vector<4x4xf32>
    %cst_18 = arith.constant dense<0.000000e+00> : vector<4xf32>
    %60 = vector.multi_reduction <add>, %59, %cst_18 [1] : vector<4x4xf32> to vector<4xf32>
    %61 = vector.shape_cast %60 : vector<4xf32> to vector<4x1xf32>
    %62 = vector.broadcast %61 : vector<4x1xf32> to vector<4x4xf32>
    %63 = arith.divf %59, %62 : vector<4x4xf32>
    %64 = arith.truncf %63 : vector<4x4xf32> to vector<4x4xbf16>
    %cst_19 = arith.constant dense<0.000000e+00> : vector<4x8xf32>
    %65 = tpu.matmul %64, %53, %cst_19 {dimension_numbers = #tpu.dot_dimension_numbers<[1], [0], [0], [1], [0, 0, 1, 1], [], []>} : vector<4x4xbf16>, vector<4x8xbf16>, vector<4x8xf32> -> vector<4x8xf32>
    %66 = vector.extract_strided_slice %11 {offsets = [0, 24], sizes = [4, 8], strides = [1, 1]} : vector<4x96xf32> to vector<4x8xf32>
    %67 = arith.truncf %66 : vector<4x8xf32> to vector<4x8xbf16>
    %68 = vector.extract_strided_slice %11 {offsets = [0, 56], sizes = [4, 8], strides = [1, 1]} : vector<4x96xf32> to vector<4x8xf32>
    %69 = arith.truncf %68 : vector<4x8xf32> to vector<4x8xbf16>
    %70 = vector.extract_strided_slice %11 {offsets = [0, 88], sizes = [4, 8], strides = [1, 1]} : vector<4x96xf32> to vector<4x8xf32>
    %71 = arith.truncf %70 : vector<4x8xf32> to vector<4x8xbf16>
    %cst_20 = arith.constant dense<0.000000e+00> : vector<4x4xf32>
    %72 = tpu.matmul %67, %69, %cst_20 {dimension_numbers = #tpu.dot_dimension_numbers<[1], [1], [0], [0], [0, 0, 1, 0], [], []>} : vector<4x8xbf16>, vector<4x8xbf16>, vector<4x4xf32> -> vector<4x4xf32>
    %cst_21 = arith.constant dense<0xFF800000> : vector<4xf32>
    %73 = vector.multi_reduction <maximumf>, %72, %cst_21 [1] : vector<4x4xf32> to vector<4xf32>
    %74 = vector.shape_cast %73 : vector<4xf32> to vector<4x1xf32>
    %75 = vector.broadcast %74 : vector<4x1xf32> to vector<4x4xf32>
    %76 = arith.subf %72, %75 : vector<4x4xf32>
    %77 = math.exp %76 : vector<4x4xf32>
    %cst_22 = arith.constant dense<0.000000e+00> : vector<4xf32>
    %78 = vector.multi_reduction <add>, %77, %cst_22 [1] : vector<4x4xf32> to vector<4xf32>
    %79 = vector.shape_cast %78 : vector<4xf32> to vector<4x1xf32>
    %80 = vector.broadcast %79 : vector<4x1xf32> to vector<4x4xf32>
    %81 = arith.divf %77, %80 : vector<4x4xf32>
    %82 = arith.truncf %81 : vector<4x4xf32> to vector<4x4xbf16>
    %cst_23 = arith.constant dense<0.000000e+00> : vector<4x8xf32>
    %83 = tpu.matmul %82, %71, %cst_23 {dimension_numbers = #tpu.dot_dimension_numbers<[1], [0], [0], [1], [0, 0, 1, 1], [], []>} : vector<4x4xbf16>, vector<4x8xbf16>, vector<4x8xf32> -> vector<4x8xf32>
    %84 = tpu.concatenate %29, %47, %65, %83 in 1 : vector<4x8xf32>, vector<4x8xf32>, vector<4x8xf32>, vector<4x8xf32> -> vector<4x32xf32>
    %85 = arith.truncf %84 : vector<4x32xf32> to vector<4x32xbf16>
    %c0_24 = arith.constant 0 : index
    %c0_25 = arith.constant 0 : index
    %c0_26 = arith.constant 0 : index
    %86 = vector.load %arg7[%c0_24, %c0_25, %c0_26] : memref<1x32x32xbf16, #tpu.memory_space<vmem>>, vector<1x32x32xbf16>
    %87 = vector.shape_cast %86 : vector<1x32x32xbf16> to vector<32x32xbf16>
    %cst_27 = arith.constant dense<0.000000e+00> : vector<4x32xf32>
    %88 = tpu.matmul %85, %87, %cst_27 {dimension_numbers = #tpu.dot_dimension_numbers<[1], [0], [0], [1], [0, 0, 1, 1], [], []>} : vector<4x32xbf16>, vector<32x32xbf16>, vector<4x32xf32> -> vector<4x32xf32>
    %c0_28 = arith.constant 0 : index
    %c0_29 = arith.constant 0 : index
    %c0_30 = arith.constant 0 : index
    %89 = vector.load %arg8[%c0_28, %c0_29, %c0_30] : memref<1x1x32xf32, #tpu.memory_space<vmem>>, vector<1x1x32xf32>
    %90 = vector.shape_cast %89 : vector<1x1x32xf32> to vector<1x32xf32>
    %91 = vector.broadcast %90 : vector<1x32xf32> to vector<4x32xf32>
    %92 = arith.addf %88, %91 : vector<4x32xf32>
    %93 = arith.addf %3, %92 : vector<4x32xf32>
    %c0_31 = arith.constant 0 : index
    %c0_32 = arith.constant 0 : index
    %c0_33 = arith.constant 0 : index
    %94 = vector.load %arg9[%c0_31, %c0_32, %c0_33] : memref<1x1x32xf32, #tpu.memory_space<vmem>>, vector<1x1x32xf32>
    %95 = vector.shape_cast %94 : vector<1x1x32xf32> to vector<1x32xf32>
    %c0_34 = arith.constant 0 : index
    %c0_35 = arith.constant 0 : index
    %c0_36 = arith.constant 0 : index
    %96 = vector.load %arg10[%c0_34, %c0_35, %c0_36] : memref<1x1x32xf32, #tpu.memory_space<vmem>>, vector<1x1x32xf32>
    %97 = vector.shape_cast %96 : vector<1x1x32xf32> to vector<1x32xf32>
    %cst_37 = arith.constant dense<0.000000e+00> : vector<4xf32>
    %98 = vector.multi_reduction <add>, %93, %cst_37 [1] : vector<4x32xf32> to vector<4xf32>
    %99 = vector.shape_cast %98 : vector<4xf32> to vector<4x1xf32>
    %cst_38 = arith.constant 3.200000e+01 : f32
    %100 = vector.broadcast %cst_38 : f32 to vector<4x1xf32>
    %101 = arith.divf %99, %100 : vector<4x1xf32>
    %102 = vector.broadcast %101 : vector<4x1xf32> to vector<4x32xf32>
    %103 = arith.subf %93, %102 : vector<4x32xf32>
    %104 = arith.mulf %103, %103 : vector<4x32xf32>
    %cst_39 = arith.constant dense<0.000000e+00> : vector<4xf32>
    %105 = vector.multi_reduction <add>, %104, %cst_39 [1] : vector<4x32xf32> to vector<4xf32>
    %106 = vector.shape_cast %105 : vector<4xf32> to vector<4x1xf32>
    %cst_40 = arith.constant 3.200000e+01 : f32
    %107 = vector.broadcast %cst_40 : f32 to vector<4x1xf32>
    %108 = arith.divf %106, %107 : vector<4x1xf32>
    %109 = vector.broadcast %101 : vector<4x1xf32> to vector<4x32xf32>
    %110 = arith.subf %93, %109 : vector<4x32xf32>
    %cst_41 = arith.constant 9.99999974E-6 : f32
    %111 = vector.broadcast %cst_41 : f32 to vector<4x1xf32>
    %112 = arith.addf %108, %111 : vector<4x1xf32>
    %113 = math.rsqrt %112 : vector<4x1xf32>
    %114 = vector.broadcast %113 : vector<4x1xf32> to vector<4x32xf32>
    %115 = arith.mulf %110, %114 : vector<4x32xf32>
    %116 = vector.broadcast %95 : vector<1x32xf32> to vector<4x32xf32>
    %117 = arith.mulf %115, %116 : vector<4x32xf32>
    %118 = vector.broadcast %97 : vector<1x32xf32> to vector<4x32xf32>
    %119 = arith.addf %117, %118 : vector<4x32xf32>
    %120 = arith.truncf %119 : vector<4x32xf32> to vector<4x32xbf16>
    %c0_42 = arith.constant 0 : index
    %c0_43 = arith.constant 0 : index
    %c0_44 = arith.constant 0 : index
    %121 = vector.load %arg11[%c0_42, %c0_43, %c0_44] : memref<1x32x64xbf16, #tpu.memory_space<vmem>>, vector<1x32x64xbf16>
    %122 = vector.shape_cast %121 : vector<1x32x64xbf16> to vector<32x64xbf16>
    %cst_45 = arith.constant dense<0.000000e+00> : vector<4x64xf32>
    %123 = tpu.matmul %120, %122, %cst_45 {dimension_numbers = #tpu.dot_dimension_numbers<[1], [0], [0], [1], [0, 0, 1, 1], [], []>} : vector<4x32xbf16>, vector<32x64xbf16>, vector<4x64xf32> -> vector<4x64xf32>
    %c0_46 = arith.constant 0 : index
    %c0_47 = arith.constant 0 : index
    %c0_48 = arith.constant 0 : index
    %124 = vector.load %arg12[%c0_46, %c0_47, %c0_48] : memref<1x1x64xf32, #tpu.memory_space<vmem>>, vector<1x1x64xf32>
    %125 = vector.shape_cast %124 : vector<1x1x64xf32> to vector<1x64xf32>
    %126 = vector.broadcast %125 : vector<1x64xf32> to vector<4x64xf32>
    %127 = arith.addf %123, %126 : vector<4x64xf32>
    %cst_49 = arith.constant 5.000000e-01 : f32
    %128 = vector.broadcast %cst_49 : f32 to vector<4x64xf32>
    %129 = arith.mulf %128, %127 : vector<4x64xf32>
    %cst_50 = arith.constant 4.471500e-02 : f32
    %130 = vector.broadcast %cst_50 : f32 to vector<4x64xf32>
    %131 = arith.mulf %130, %127 : vector<4x64xf32>
    %132 = arith.mulf %131, %127 : vector<4x64xf32>
    %133 = arith.mulf %132, %127 : vector<4x64xf32>
    %134 = arith.addf %127, %133 : vector<4x64xf32>
    %cst_51 = arith.constant 0.797884583 : f32
    %135 = vector.broadcast %cst_51 : f32 to vector<4x64xf32>
    %136 = arith.mulf %135, %134 : vector<4x64xf32>
    %137 = math.tanh %136 : vector<4x64xf32>
    %cst_52 = arith.constant 1.000000e+00 : f32
    %138 = vector.broadcast %cst_52 : f32 to vector<4x64xf32>
    %139 = arith.addf %138, %137 : vector<4x64xf32>
    %140 = arith.mulf %129, %139 : vector<4x64xf32>
    %141 = arith.truncf %140 : vector<4x64xf32> to vector<4x64xbf16>
    %c0_53 = arith.constant 0 : index
    %c0_54 = arith.constant 0 : index
    %c0_55 = arith.constant 0 : index
    %142 = vector.load %arg13[%c0_53, %c0_54, %c0_55] : memref<1x64x32xbf16, #tpu.memory_space<vmem>>, vector<1x64x32xbf16>
    %143 = vector.shape_cast %142 : vector<1x64x32xbf16> to vector<64x32xbf16>
    %cst_56 = arith.constant dense<0.000000e+00> : vector<4x32xf32>
    %144 = tpu.matmul %141, %143, %cst_56 {dimension_numbers = #tpu.dot_dimension_numbers<[1], [0], [0], [1], [0, 0, 1, 1], [], []>} : vector<4x64xbf16>, vector<64x32xbf16>, vector<4x32xf32> -> vector<4x32xf32>
    %c0_57 = arith.constant 0 : index
    %c0_58 = arith.constant 0 : index
    %c0_59 = arith.constant 0 : index
    %145 = vector.load %arg14[%c0_57, %c0_58, %c0_59] : memref<1x1x32xf32, #tpu.memory_space<vmem>>, vector<1x1x32xf32>
    %146 = vector.shape_cast %145 : vector<1x1x32xf32> to vector<1x32xf32>
    %147 = vector.broadcast %146 : vector<1x32xf32> to vector<4x32xf32>
    %148 = arith.addf %144, %147 : vector<4x32xf32>
    %149 = arith.addf %119, %148 : vector<4x32xf32>
    %c0_60 = arith.constant 0 : index
    %c0_61 = arith.constant 0 : index
    %c0_62 = arith.constant 0 : index
    %150 = vector.load %arg15[%c0_60, %c0_61, %c0_62] : memref<1x1x32xf32, #tpu.memory_space<vmem>>, vector<1x1x32xf32>
    %151 = vector.shape_cast %150 : vector<1x1x32xf32> to vector<1x32xf32>
    %c0_63 = arith.constant 0 : index
    %c0_64 = arith.constant 0 : index
    %c0_65 = arith.constant 0 : index
    %152 = vector.load %arg16[%c0_63, %c0_64, %c0_65] : memref<1x1x32xf32, #tpu.memory_space<vmem>>, vector<1x1x32xf32>
    %153 = vector.shape_cast %152 : vector<1x1x32xf32> to vector<1x32xf32>
    %cst_66 = arith.constant dense<0.000000e+00> : vector<4xf32>
    %154 = vector.multi_reduction <add>, %149, %cst_66 [1] : vector<4x32xf32> to vector<4xf32>
    %155 = vector.shape_cast %154 : vector<4xf32> to vector<4x1xf32>
    %cst_67 = arith.constant 3.200000e+01 : f32
    %156 = vector.broadcast %cst_67 : f32 to vector<4x1xf32>
    %157 = arith.divf %155, %156 : vector<4x1xf32>
    %158 = vector.broadcast %157 : vector<4x1xf32> to vector<4x32xf32>
    %159 = arith.subf %149, %158 : vector<4x32xf32>
    %160 = arith.mulf %159, %159 : vector<4x32xf32>
    %cst_68 = arith.constant dense<0.000000e+00> : vector<4xf32>
    %161 = vector.multi_reduction <add>, %160, %cst_68 [1] : vector<4x32xf32> to vector<4xf32>
    %162 = vector.shape_cast %161 : vector<4xf32> to vector<4x1xf32>
    %cst_69 = arith.constant 3.200000e+01 : f32
    %163 = vector.broadcast %cst_69 : f32 to vector<4x1xf32>
    %164 = arith.divf %162, %163 : vector<4x1xf32>
    %165 = vector.broadcast %157 : vector<4x1xf32> to vector<4x32xf32>
    %166 = arith.subf %149, %165 : vector<4x32xf32>
    %cst_70 = arith.constant 9.99999974E-6 : f32
    %167 = vector.broadcast %cst_70 : f32 to vector<4x1xf32>
    %168 = arith.addf %164, %167 : vector<4x1xf32>
    %169 = math.rsqrt %168 : vector<4x1xf32>
    %170 = vector.broadcast %169 : vector<4x1xf32> to vector<4x32xf32>
    %171 = arith.mulf %166, %170 : vector<4x32xf32>
    %172 = vector.broadcast %151 : vector<1x32xf32> to vector<4x32xf32>
    %173 = arith.mulf %171, %172 : vector<4x32xf32>
    %174 = vector.broadcast %153 : vector<1x32xf32> to vector<4x32xf32>
    %175 = arith.addf %173, %174 : vector<4x32xf32>
    %c0_71 = arith.constant 0 : index
    %c0_72 = arith.constant 0 : index
    %176 = vector.load %arg24[%c0_71, %c0_72] : memref<4x32xf32, #tpu.memory_space<vmem>>, vector<4x32xf32>
    tpu.vector_store %arg24[%c0_71, %c0_72], %175 {strides = array<i32>} : memref<4x32xf32, #tpu.memory_space<vmem>>, vector<4x32xf32>,
    %c1_i32 = arith.constant 1 : i32
    %177 = arith.cmpi eq, %arg1, %c1_i32 : i32
    %178 = arith.extui %177 : i1 to i32
    %c0_i32_73 = arith.constant 0 : i32
    %179 = arith.cmpi ne, %178, %c0_i32_73 : i32
    scf.if %179 {
      %c0_74 = arith.constant 0 : index
      %c0_75 = arith.constant 0 : index
      %180 = vector.load %arg17[%c0_74, %c0_75] : memref<1x32xf32, #tpu.memory_space<vmem>>, vector<1x32xf32>
      %c0_76 = arith.constant 0 : index
      %c0_77 = arith.constant 0 : index
      %181 = vector.load %arg18[%c0_76, %c0_77] : memref<1x32xf32, #tpu.memory_space<vmem>>, vector<1x32xf32>
      %cst_78 = arith.constant dense<0.000000e+00> : vector<4xf32>
      %182 = vector.multi_reduction <add>, %175, %cst_78 [1] : vector<4x32xf32> to vector<4xf32>
      %183 = vector.shape_cast %182 : vector<4xf32> to vector<4x1xf32>
      %cst_79 = arith.constant 3.200000e+01 : f32
      %184 = vector.broadcast %cst_79 : f32 to vector<4x1xf32>
      %185 = arith.divf %183, %184 : vector<4x1xf32>
      %186 = vector.broadcast %185 : vector<4x1xf32> to vector<4x32xf32>
      %187 = arith.subf %175, %186 : vector<4x32xf32>
      %188 = arith.mulf %187, %187 : vector<4x32xf32>
      %cst_80 = arith.constant dense<0.000000e+00> : vector<4xf32>
      %189 = vector.multi_reduction <add>, %188, %cst_80 [1] : vector<4x32xf32> to vector<4xf32>
      %190 = vector.shape_cast %189 : vector<4xf32> to vector<4x1xf32>
      %cst_81 = arith.constant 3.200000e+01 : f32
      %191 = vector.broadcast %cst_81 : f32 to vector<4x1xf32>
      %192 = arith.divf %190, %191 : vector<4x1xf32>
      %193 = vector.broadcast %185 : vector<4x1xf32> to vector<4x32xf32>
      %194 = arith.subf %175, %193 : vector<4x32xf32>
      %cst_82 = arith.constant 9.99999974E-6 : f32
      %195 = vector.broadcast %cst_82 : f32 to vector<4x1xf32>
      %196 = arith.addf %192, %195 : vector<4x1xf32>
      %197 = math.rsqrt %196 : vector<4x1xf32>
      %198 = vector.broadcast %197 : vector<4x1xf32> to vector<4x32xf32>
      %199 = arith.mulf %194, %198 : vector<4x32xf32>
      %200 = vector.broadcast %180 : vector<1x32xf32> to vector<4x32xf32>
      %201 = arith.mulf %199, %200 : vector<4x32xf32>
      %202 = vector.broadcast %181 : vector<1x32xf32> to vector<4x32xf32>
      %203 = arith.addf %201, %202 : vector<4x32xf32>
      %cst_83 = arith.constant 5.000000e-01 : f32
      %204 = vector.broadcast %cst_83 : f32 to vector<4x32xf32>
      %205 = arith.mulf %204, %203 : vector<4x32xf32>
      %cst_84 = arith.constant 4.471500e-02 : f32
      %206 = vector.broadcast %cst_84 : f32 to vector<4x32xf32>
      %207 = arith.mulf %206, %203 : vector<4x32xf32>
      %208 = arith.mulf %207, %203 : vector<4x32xf32>
      %209 = arith.mulf %208, %203 : vector<4x32xf32>
      %210 = arith.addf %203, %209 : vector<4x32xf32>
      %cst_85 = arith.constant 0.797884583 : f32
      %211 = vector.broadcast %cst_85 : f32 to vector<4x32xf32>
      %212 = arith.mulf %211, %210 : vector<4x32xf32>
      %213 = math.tanh %212 : vector<4x32xf32>
      %cst_86 = arith.constant 1.000000e+00 : f32
      %214 = vector.broadcast %cst_86 : f32 to vector<4x32xf32>
      %215 = arith.addf %214, %213 : vector<4x32xf32>
      %216 = arith.mulf %205, %215 : vector<4x32xf32>
      %217 = arith.truncf %216 : vector<4x32xf32> to vector<4x32xbf16>
      %c0_87 = arith.constant 0 : index
      %c0_88 = arith.constant 0 : index
      %218 = vector.load %arg19[%c0_87, %c0_88] : memref<32x12xbf16, #tpu.memory_space<vmem>>, vector<32x12xbf16>
      %cst_89 = arith.constant dense<0.000000e+00> : vector<4x12xf32>
      %219 = tpu.matmul %217, %218, %cst_89 {dimension_numbers = #tpu.dot_dimension_numbers<[1], [0], [0], [1], [0, 0, 1, 1], [], []>} : vector<4x32xbf16>, vector<32x12xbf16>, vector<4x12xf32> -> vector<4x12xf32>
      %c0_90 = arith.constant 0 : index
      %c0_91 = arith.constant 0 : index
      %220 = vector.load %arg20[%c0_90, %c0_91] : memref<4x12xf32, #tpu.memory_space<vmem>>, vector<4x12xf32>
      %221 = arith.mulf %219, %220 : vector<4x12xf32>
      %c0_92 = arith.constant 0 : index
      %c0_93 = arith.constant 0 : index
      %222 = vector.load %arg21[%c0_92, %c0_93] : memref<12x3xf32, #tpu.memory_space<vmem>>, vector<12x3xf32>
      %cst_94 = arith.constant dense<0.000000e+00> : vector<4x3xf32>
      %223 = tpu.matmul %221, %222, %cst_94 {dimension_numbers = #tpu.dot_dimension_numbers<[1], [0], [0], [1], [0, 0, 1, 1], [], []>} : vector<4x12xf32>, vector<12x3xf32>, vector<4x3xf32> -> vector<4x3xf32>
      %cst_95 = arith.constant dense<0.000000e+00> : vector<3xf32>
      %224 = vector.multi_reduction <add>, %223, %cst_95 [0] : vector<4x3xf32> to vector<3xf32>
      %225 = vector.shape_cast %224 : vector<3xf32> to vector<1x3xf32>
      %c0_96 = arith.constant 0 : index
      %c0_97 = arith.constant 0 : index
      %226 = vector.load %arg22[%c0_96, %c0_97] : memref<1x3xf32, #tpu.memory_space<vmem>>, vector<1x3xf32>
      %227 = arith.addf %225, %226 : vector<1x3xf32>
      %c0_98 = arith.constant 0 : index
      %c0_99 = arith.constant 0 : index
      %c0_100 = arith.constant 0 : index
      %228 = vector.load %arg23[%c0_98, %c0_99, %c0_100] : memref<1x1x3xf32, #tpu.memory_space<vmem>>, vector<1x1x3xf32>
      %229 = vector.shape_cast %228 : vector<1x1x3xf32> to vector<1x3xf32>
      %230 = vector.shape_cast %227 : vector<1x3xf32> to vector<1x1x3xf32>
      tpu.vector_store %arg23[%c0_98, %c0_99, %c0_100], %230 {strides = array<i32>} : memref<1x1x3xf32, #tpu.memory_space<vmem>>, vector<1x1x3xf32>,
    } else {
    }
    return
  }
  func.func @transform_0(%arg0: i32, %arg1: i32) -> (i32, i32, i32) {
    %c0_i32 = arith.constant 0 : i32
    %c0_i32_0 = arith.constant 0 : i32
    %c0_i32_1 = arith.constant 0 : i32
    return %arg0, %c0_i32, %c0_i32_0 : i32, i32, i32
  }
  func.func @transform_1(%arg0: i32, %arg1: i32) -> (i32, i32) {
    %c0_i32 = arith.constant 0 : i32
    %c0_i32_0 = arith.constant 0 : i32
    %c0_i32_1 = arith.constant 0 : i32
    return %c0_i32, %c0_i32_0 : i32, i32
  }
  func.func @transform_2(%arg0: i32, %arg1: i32) -> (i32, i32) {
    %c0_i32 = arith.constant 0 : i32
    %c0_i32_0 = arith.constant 0 : i32
    %c0_i32_1 = arith.constant 0 : i32
    return %c0_i32, %c0_i32_0 : i32, i32
  }
  func.func @transform_3(%arg0: i32, %arg1: i32) -> (i32, i32, i32) {
    %c0_i32 = arith.constant 0 : i32
    %c0_i32_0 = arith.constant 0 : i32
    %c0_i32_1 = arith.constant 0 : i32
    return %arg1, %c0_i32, %c0_i32_0 : i32, i32, i32
  }
  func.func @transform_4(%arg0: i32, %arg1: i32) -> (i32, i32, i32) {
    %c0_i32 = arith.constant 0 : i32
    %c0_i32_0 = arith.constant 0 : i32
    %c0_i32_1 = arith.constant 0 : i32
    return %arg1, %c0_i32, %c0_i32_0 : i32, i32, i32
  }
  func.func @transform_5(%arg0: i32, %arg1: i32) -> (i32, i32, i32) {
    %c0_i32 = arith.constant 0 : i32
    %c0_i32_0 = arith.constant 0 : i32
    %c0_i32_1 = arith.constant 0 : i32
    return %arg1, %c0_i32, %c0_i32_0 : i32, i32, i32
  }
  func.func @transform_6(%arg0: i32, %arg1: i32) -> (i32, i32, i32) {
    %c0_i32 = arith.constant 0 : i32
    %c0_i32_0 = arith.constant 0 : i32
    %c0_i32_1 = arith.constant 0 : i32
    return %arg1, %c0_i32, %c0_i32_0 : i32, i32, i32
  }
  func.func @transform_7(%arg0: i32, %arg1: i32) -> (i32, i32, i32) {
    %c0_i32 = arith.constant 0 : i32
    %c0_i32_0 = arith.constant 0 : i32
    %c0_i32_1 = arith.constant 0 : i32
    return %arg1, %c0_i32, %c0_i32_0 : i32, i32, i32
  }
  func.func @transform_8(%arg0: i32, %arg1: i32) -> (i32, i32, i32) {
    %c0_i32 = arith.constant 0 : i32
    %c0_i32_0 = arith.constant 0 : i32
    %c0_i32_1 = arith.constant 0 : i32
    return %arg1, %c0_i32, %c0_i32_0 : i32, i32, i32
  }
  func.func @transform_9(%arg0: i32, %arg1: i32) -> (i32, i32, i32) {
    %c0_i32 = arith.constant 0 : i32
    %c0_i32_0 = arith.constant 0 : i32
    %c0_i32_1 = arith.constant 0 : i32
    return %arg1, %c0_i32, %c0_i32_0 : i32, i32, i32
  }
  func.func @transform_10(%arg0: i32, %arg1: i32) -> (i32, i32, i32) {
    %c0_i32 = arith.constant 0 : i32
    %c0_i32_0 = arith.constant 0 : i32
    %c0_i32_1 = arith.constant 0 : i32
    return %arg1, %c0_i32, %c0_i32_0 : i32, i32, i32
  }
  func.func @transform_11(%arg0: i32, %arg1: i32) -> (i32, i32, i32) {
    %c0_i32 = arith.constant 0 : i32
    %c0_i32_0 = arith.constant 0 : i32
    %c0_i32_1 = arith.constant 0 : i32
    return %arg1, %c0_i32, %c0_i32_0 : i32, i32, i32
  }
  func.func @transform_12(%arg0: i32, %arg1: i32) -> (i32, i32, i32) {
    %c0_i32 = arith.constant 0 : i32
    %c0_i32_0 = arith.constant 0 : i32
    %c0_i32_1 = arith.constant 0 : i32
    return %arg1, %c0_i32, %c0_i32_0 : i32, i32, i32
  }
  func.func @transform_13(%arg0: i32, %arg1: i32) -> (i32, i32, i32) {
    %c0_i32 = arith.constant 0 : i32
    %c0_i32_0 = arith.constant 0 : i32
    %c0_i32_1 = arith.constant 0 : i32
    return %arg1, %c0_i32, %c0_i32_0 : i32, i32, i32
  }
  func.func @transform_14(%arg0: i32, %arg1: i32) -> (i32, i32, i32) {
    %c0_i32 = arith.constant 0 : i32
    %c0_i32_0 = arith.constant 0 : i32
    %c0_i32_1 = arith.constant 0 : i32
    return %arg1, %c0_i32, %c0_i32_0 : i32, i32, i32
  }
  func.func @transform_15(%arg0: i32, %arg1: i32) -> (i32, i32) {
    %c0_i32 = arith.constant 0 : i32
    %c0_i32_0 = arith.constant 0 : i32
    %c0_i32_1 = arith.constant 0 : i32
    return %c0_i32, %c0_i32_0 : i32, i32
  }
  func.func @transform_16(%arg0: i32, %arg1: i32) -> (i32, i32) {
    %c0_i32 = arith.constant 0 : i32
    %c0_i32_0 = arith.constant 0 : i32
    %c0_i32_1 = arith.constant 0 : i32
    return %c0_i32, %c0_i32_0 : i32, i32
  }
  func.func @transform_17(%arg0: i32, %arg1: i32) -> (i32, i32) {
    %c0_i32 = arith.constant 0 : i32
    %c0_i32_0 = arith.constant 0 : i32
    %c0_i32_1 = arith.constant 0 : i32
    return %c0_i32, %c0_i32_0 : i32, i32
  }
  func.func @transform_18(%arg0: i32, %arg1: i32) -> (i32, i32) {
    %c0_i32 = arith.constant 0 : i32
    %c0_i32_0 = arith.constant 0 : i32
    %c0_i32_1 = arith.constant 0 : i32
    return %c0_i32, %c0_i32_0 : i32, i32
  }
  func.func @transform_19(%arg0: i32, %arg1: i32) -> (i32, i32) {
    %c0_i32 = arith.constant 0 : i32
    %c0_i32_0 = arith.constant 0 : i32
    %c0_i32_1 = arith.constant 0 : i32
    return %c0_i32, %c0_i32_0 : i32, i32
  }
  func.func @transform_20(%arg0: i32, %arg1: i32) -> (i32, i32) {
    %c0_i32 = arith.constant 0 : i32
    %c0_i32_0 = arith.constant 0 : i32
    %c0_i32_1 = arith.constant 0 : i32
    return %c0_i32, %c0_i32_0 : i32, i32
  }
  func.func @transform_21(%arg0: i32, %arg1: i32) -> (i32, i32, i32) {
    %c0_i32 = arith.constant 0 : i32
    %c0_i32_0 = arith.constant 0 : i32
    %c0_i32_1 = arith.constant 0 : i32
    return %arg0, %c0_i32, %c0_i32_0 : i32, i32, i32
  }
}

</mosaic_0001>

<bundles_post_ra>
// kernel: tpu_custom_call.1
= control target key start
LH: loop header
LB: loop body
LE: loop exit
PB: predicated region body
PF: predicated region fallthrough
CT: control target
= control target key end

     0   :  { %s3185_s0 = inlined_call_operand.vmem [shape: bf16[2,4,16], index: 0, kind: input, shape index: {}]   ;;  %s3186_s1 = inlined_call_operand.vmem [shape: bf16[16,32], index: 1, kind: input, shape index: {}]   ;;  %s3187_s2 = inlined_call_operand.hbm [shape: f32[1,32], index: 2, kind: input, shape index: {}]   ;;  %s3188_s3 = inlined_call_operand.vmem [shape: bf16[2,32,96], index: 3, kind: input, shape index: {}]   ;;  %s3189_s4 = inlined_call_operand.vmem [shape: f32[2,1,96], index: 4, kind: input, shape index: {}]   ;;  %s3190_s5 = inlined_call_operand.vmem [shape: bf16[2,32,32], index: 5, kind: input, shape index: {}]   ;;  %s3191_s6 = inlined_call_operand.vmem [shape: f32[2,1,32], index: 6, kind: input, shape index: {}]   ;;  %s3192_s7 = inlined_call_operand.vmem [shape: f32[2,1,32], index: 7, kind: input, shape index: {}]   ;;  %s3193_s8 = inlined_call_operand.vmem [shape: f32[2,1,32], index: 8, kind: input, shape index: {}]   ;;  %s3194_s9 = inlined_call_operand.vmem [shape: bf16[2,32,64], index: 9, kind: input, shape index: {}]   ;;  %s3195_s10 = inlined_call_operand.vmem [shape: f32[2,1,64], index: 10, kind: input, shape index: {}]   ;;  %s3196_s11 = inlined_call_operand.vmem [shape: bf16[2,64,32], index: 11, kind: input, shape index: {}]   ;;  %s3197_s12 = inlined_call_operand.vmem [shape: f32[2,1,32], index: 12, kind: input, shape index: {}]   ;;  %s3198_s13 = inlined_call_operand.vmem [shape: f32[2,1,32], index: 13, kind: input, shape index: {}]   ;;  %s3199_s14 = inlined_call_operand.vmem [shape: f32[2,1,32], index: 14, kind: input, shape index: {}]   ;;  %s3200_s15 = inlined_call_operand.vmem [shape: f32[1,32], index: 15, kind: input, shape index: {}]   ;;  %s3201_s16 = inlined_call_operand.vmem [shape: f32[1,32], index: 16, kind: input, shape index: {}]   ;;  %s3202_s17 = inlined_call_operand.vmem [shape: bf16[32,12], index: 17, kind: input, shape index: {}]   ;;  %s3203_s18 = inlined_call_operand.vmem [shape: f32[4,12], index: 18, kind: input, shape index: {}]   ;;  %s3204_s19 = inlined_call_operand.vmem [shape: f32[12,3], index: 19, kind: input, shape index: {}]   ;;  %s3205_s20 = inlined_call_operand.vmem [shape: f32[1,3], index: 20, kind: input, shape index: {}]   ;;  %s3206_s21 = inlined_call_operand.hbm [shape: f32[2,1,3], index: 21, kind: output, shape index: {}]  }
   0x1   :  { %3229 = sst [smem:[#allocation22_spill]] %s3185_s0 }
   0x2   :  { %3230 = sst [smem:[#allocation23_spill]] %s3186_s1 }
   0x3   :  { %3231 = sst [smem:[#allocation24_spill]] %s3187_s2 }
   0x4   :  { %3232 = sst [smem:[#allocation25_spill]] %s3188_s3 }
   0x5   :  { %3233 = sst [smem:[#allocation26_spill]] %s3189_s4 }
   0x6   :  { %3234 = sst [smem:[#allocation27_spill]] %s3190_s5 }
   0x7   :  { %3235 = sst [smem:[#allocation28_spill]] %s3200_s15 }
   0x8   :  { %3236 = sst [smem:[#allocation29_spill]] %s3201_s16 }
   0x9   :  { %3237 = sst [smem:[#allocation30_spill]] %s3202_s17 }
   0xa   :  { %3238 = sst [smem:[#allocation31_spill]] %s3203_s18 }
   0xb   :  { %3239 = sst [smem:[#allocation32_spill]] %s3204_s19 }
   0xc   :  { %3240 = sst [smem:[#allocation33_spill]] %s3205_s20 }
   0xd   :  { %3241 = sst [smem:[#allocation34_spill]] %s3206_s21 }
   0xe   :  { %26 = vsyncpa [#allocation4], 0 }
   0xf   :  { %27 = vsyncpa [#allocation5], 0 }
  0x10   :  { %29 = vsyncpa [#allocation5 + $0x1], 0  ;;  %s2779_s2 = smov 0   ;;  %s2781_s25 = smov 0  }
  0x11   :  { %s2783_s26 = smov 0   ;;  %s2785_s27 = smov 0  }
  0x12   :  { %s2787_s3 = smov 0   ;;  %s2789_s28 = smov 0  }
  0x13   :  { %s2791_s29 = smov 0   ;;  %s2793_s0 = smov 0  }
  0x14 LB: > { %3242 = sst [smem:[#allocation9_spill]] %s2615_s2  ;;  %s2162_s4 = sadd.s32 4294967295, %s2643_s0   ;;  %s2643_s0 = sphi %s2793_s0, %s35_s0   ;;  %s2639_s29 = sphi %s2791_s29, %s3299_s29   ;;  %s2635_s28 = sphi %s2789_s28, %s3302_s28   ;;  %s2631_s3 = sphi %s2787_s3, %s3297_s3   ;;  %s2627_s27 = sphi %s2785_s27, %s3296_s27   ;;  %s2623_s26 = sphi %s2783_s26, %s3295_s26   ;;  %s2619_s25 = sphi %s2781_s25, %s3301_s25   ;;  %s2615_s2 = sphi %s2779_s2, %s3300_s2  }
  0x15   : > { %3243 = sst [smem:[#allocation10_spill]] %s2623_s26  ;;  %s2163_s30 = sadd.s32 4294967294, %s2643_s0  }
  0x16   : > { %3244 = sst [smem:[#allocation11_spill]] %s2627_s27  ;;  %s44_s5 = sadd.s32 1, %s2635_s28 }
  0x17   : > { %3245 = sst [smem:[#allocation12_spill]] %s2631_s3  ;;  %s47_s22 = sadd.s32 1, %s2639_s29 }
  0x18   : > { %3246 = sst [smem:[#allocation13_spill]] %s2635_s28  ;;  %p45_p0 = scmp.ge.s32.totalorder %s44_s5, 2 }
  0x19   : > { %3247 = sst [smem:[#allocation14_spill]] %s2639_s29  ;;  %s560_s23 = sadd.s32 1, %s2623_s26 }
  0x1a   : > { %3248 = sst [smem:[#allocation15_spill]] %s2643_s0  ;;  %p570_p1 = scmp.ne.s32.totalorder %s2623_s26, %s2619_s25 }
  0x1b   : > { %p571_p2 = scmp.eq.s32.totalorder %s2162_s4, 3  ;;  %s3304_s5 = smov (%p45_p0, %s44_s5), 0 }
  0x1c   : > { %3249 = sst [smem:[#allocation16_spill]] %s3304_s5  ;;  %s3306_s22 = smov (!%p45_p0, %s47_s22), %s2639_s29 }
  0x1d   : > { %p2829_p3 = por %p571_p2, %p570_p1  ;;  %p576_p4 = scmp.ne.s32.totalorder %s2619_s25, %s2615_s2 }
  0x1e   : > { %p49_p5 = scmp.ge.s32.totalorder %s3306_s22, 2  ;;  %p577_p6 = scmp.eq.s32.totalorder %s2163_s30, 3 }
  0x1f   : > { %s3250_s1 = scalar_select %p2829_p3, 1, 0 }
  0x20   : > { %p2164_p7 = scmp.ge.s32.totalorder %s2643_s0, 1  ;;  %p584_p8 = scmp.lt.s32.totalorder %s2643_s0, 5 }
  0x21   : > { %3251 = sst [smem:[#allocation17_spill]] %s3250_s1  ;;  %s3308_s22 = smov (%p49_p5, %s3306_s22), 0 }
  0x22   : > { %3252 = sst [smem:[#allocation18_spill]] %s3308_s22  ;;  %p2839_p9 = por %p577_p6, %p576_p4 }
  0x23   : > { %p2843_p10 = pnand %p2164_p7, %p584_p8  ;;  %s557_s5 = ssub.s32 %s2639_s29, %s3308_s22 }
  0x24   : > { %s3253_s24 = scalar_select %p2839_p9, 1, 0 }
  0x25   : > { %s3255_s28 = scalar_select %p2843_p10, 1, 0 }
  0x26   : > { %3254 = sst [smem:[#allocation19_spill]] %s3253_s24  ;;  %p558_p11 = scmp.eq.s32.totalorder %s557_s5, 0 }
  0x27   : > { %p2380_p12 = pneg %p2843_p10  ;;  %p2851_p13 = scmp.eq.s32.totalorder %s2162_s4, 0 }
  0x28   : > { %s2856_s2 = scalar_select %p558_p11, %s2623_s26, %s560_s23  }
  0x29   : > { %s3256_s30 = scalar_select %p2851_p13, 1, 0 }
  0x2a   : > { %3257 = sst [smem:[#allocation20_spill]] %s2856_s2  ;;  %s2645_s0 = smov [#allocation3]  }
  0x2b   : > { %s600_s21 = sshll.u32 %s2645_s0, 4  ;;  %p2860_p0 = pnand %p2851_p13, %p2380_p12  ;;  %s601_s21 = int_to_ptr.vmem [resolvable:$true] %s600_s21 }
  0x2c   : > { %s3259_s29 = sld [smem:[#allocation24_spill]] }
  0x2d   : > { %p2519_p2 = pneg %p2860_p0 }
  0x32   : > { %s3260_s1 = smov %s3259_s29  ;;  %s2517_s20 = scalar_lea.hbm %s3259_s29, 16 }
  0x33   : > { %p2518_p1 = scmp.ne.s32.totalorder %s3260_s1, %s2517_s20  ;;  %p2524_p6 = scmp.lt.u32.totalorder %s2517_s20, %s3260_s1 }
  0x35   : > { %p2520_p4 = pnand %p2519_p2, %p2518_p1 }
  0x37   : > { %p2521_p5 = pneg %p2520_p4 }
  0x39   : > { %p2526_p7 = pnand %p2524_p6, %p2521_p5 }
  0x3b   : > { %2529 = shalt.err (!%p2526_p7)
}
  0x3c   : > { %s2530_s2 = scalar_lea.vmem %s601_s21, 16  ;;  %s2537_s22 = scalar_lea.vmem %s601_s21, 32 }
  0x3d   : > { %p2531_p8 = scmp.ne.s32.totalorder %s601_s21, %s2530_s2  ;;  %p2538_p9 = scmp.lt.s32.totalorder %s601_s21, %s601_s21 }
  0x3e   : > { %p2539_p3 = scmp.lt.s32.totalorder %s2537_s22, %s2530_s2 }
  0x3f   : > { %p2533_p11 = pnand %p2531_p8, %p2519_p2 }
  0x40   : > { %p2540_p13 = por %p2539_p3, %p2538_p9 }
  0x41   : > { %p2534_p12 = pneg %p2533_p11 }
  0x43   : > { %p2541_p10 = pnand %p2540_p13, %p2534_p12 }
  0x45   : > { %2544 = shalt.err (!%p2541_p10)
}
  0x46   : > { %2383 = dma.hbm_to_vmem [thread:$0]  (!%p2860_p0), %s3260_s1, 16, %s601_s21, [#allocation4]  }
  0x47   : > { %p3261_p1 = scmp.ne.s32.totalorder %s3255_s28, 0 }
  0x49   : > { %718 = sbr.rel (%p3261_p1) target bundleno = 3711 (0xe7f), region = 104 }
  0x50   : > { %p3262_p4 = scmp.ne.s32.totalorder %s3256_s30, 0 }
  0x52   : > { %2606 = dma.done.wait (%p3262_p4), [#allocation4], 16  }
  0x53   : > { %2608 = vsyncadd (%p3262_p4), [#allocation4], 4294967280  ;;  %p820_p3 = scmp.lt.s32.totalorder %s2631_s3, 1  ;;  %p824_p9 = scmp.lt.s32.totalorder %s2627_s27, 1 }
  0x54   : > { %s3263_s5 = sld [smem:[#allocation22_spill]]  ;;  %s3264_s18 = sld [smem:[#allocation25_spill]] }
  0x55   : > { %s821_s2 = scalar_select %p820_p3, %s2631_s3, 1 }
  0x56   : > { %s2891_s24 = scalar_select %p824_p9, %s2627_s27, 1 }
  0x57   : > { %s2169_s21 = sshll.u32 %s821_s2, 1  ;;  %s3266_s26 = sld [smem:[#allocation26_spill]] }
  0x58   : > { %s2223_s0 = sshll.u32 %s2891_s24, 4  ;;  %s3267_s15 = sld [smem:[#allocation27_spill]] }
  0x59   : > { %s2226_s20 = sshll.u32 %s2891_s24, 5  ;;  %s3268_s16 = sand.u32 1, %s2619_s25  }
  0x5a   : > { %s823_s4 = scalar_lea.vmem %s3263_s5, %s2169_s21  ;;  %s2900_s29 = scalar_lea.vmem %s3264_s18, %s2223_s0 }
  0x5b   : > { %3265 = sst [smem:[#allocation21_spill]] %s2900_s29  ;;  %s2940_s5 = scalar_lea.vmem %s3196_s11, %s2226_s20 }
  0x5c   : > { %s864_s29 = scalar_lea.vmem %s3198_s13, %s2891_s24  ;;  %s867_s18 = scalar_lea.vmem %s3199_s14, %s2891_s24 }
  0x5d   : > { %s831_s3 = scalar_lea.vmem %s3266_s26, %s2891_s24  ;;  %s2926_s26 = scalar_lea.vmem %s3194_s9, %s2223_s0 }
  0x5e   : > { %s2909_s17 = scalar_lea.vmem %s3267_s15, %s2223_s0  ;;  %s2952_s15 = scalar_lea.vmem [#allocation6], %s3268_s16 }
  0x5f   : > { %s3269_s19 = sld [smem:[#allocation11_spill]] }
  0x65   : > { %p2178_p10 = scmp.ne.s32.totalorder %s3269_s19, 0 }
  0x66   : > { %s3270_s28 = sld [smem:[#allocation23_spill]] (!%p2178_p10)  ;;  %v2646_v1 = vmov (!%p2178_p10), 0.0   ;;  %vm2647_vm0 = vmmov (!%p2178_p10), 0   ;;  %v873_v2 = vld [vmem:[%s823_s4] sm:$0x3] (!%p2178_p10)  ;;  %vm889_vm1 = vcmask (!%p2178_p10), 130048  }
  0x67   : > { %872 = sbr.rel (%p2178_p10) target bundleno = 327 (0x147), region = 112  ;;  %2265 = vmatprep.subr.bf16.mxu0 (!%p2178_p10), %v2646_v1  ;;  %2267 = vmatprep.mubr.msk.bf16.mxu0 (!%p2178_p10), %vm2647_vm0, %v2646_v1  ;;  %v2179_v3 = vld [vmem:[#allocation3] ss:$0 sm:$0xff] (!%p2178_p10)  ;;  %vm933_vm2 = vcmask (!%p2178_p10), 257024  }
  0x6c   : > { %v2478_v0 = vld [vmem:[%s3270_s28] sm:$0xff] (!%p2178_p10)  }
  0x6d   : > { %2266 = vmatpush3.bf16.msra.mxu0 (!%p2178_p10), %v2478_v0 }
  0x70   : > { %2268 = vmatmul.mubr.msk.bf16.vlgmr.msra.gmra.mrb[0].mxu0 %vm889_vm1, %v873_v2 }
 0x143   : > { %v927_v4 = vpop.f32.mrb[0].mxu0 }
 0x144   : > { %v928_v5 = vadd.f32 %v2179_v3, %v927_v4  ;;  %v2269_v6 = vpop.f32.mrb[1].mxu0 }
 0x145   : > { %v930_v7 = vpop.f32.mrb[2].mxu0 }
 0x146   : > { %934 = vst.msk [vmem:[#allocation2] sm:$0xf] %vm933_vm2, %v928_v5  ;;  %v2270_v8 = vpop.f32.mrb[3].mxu0 }
 0x147 PF: > { %s3271_s19 = sld [smem:[#allocation21_spill]]  ;;  %v2648_v10 = vmov 0.0   ;;  %vm2649_vm3 = vmmov 0   ;;  %vm960_vm4 = vcmask 261120   ;;  %v2182_v14 = vld [vmem:[%s831_s3] ss:$0 sm:$0xff] }
 0x148   : > { %2271 = vmatprep.subr.bf16.mxu0 %v2648_v10  ;;  %2279 = vmatprep.subr.bf16.mxu1 %v2648_v10  ;;  %s2650_s21 = smov 120   ;;  %s2651_s30 = smov 96   ;;  %vm1008_vm5 = vcmask 64512   ;;  %vm1055_vm6 = vcmask 27648   ;;  %vm1074_vm7 = vcmask 1041408   ;;  %vm1070_vm8 = vcmask 31744  }
 0x149   : > { %2275 = vmatprep.mubr.msk.bf16.mxu0 %vm2649_vm3, %v2648_v10  ;;  %2281 = vmatprep.mubr.msk.bf16.mxu1 %vm2649_vm3, %v2648_v10  ;;  %s2652_s23 = smov 80   ;;  %s2653_s22 = smov 88   ;;  %vm1461_vm9 = vcmask 130048   ;;  %vm1463_vm10 = vcmask 195584   ;;  %vm1535_vm11 = vcmask 257024   ;;  %vm1680_vm12 = vcmask 523264  }
 0x14a   : > { %s2654_s3 = smov 72   ;;  %s2655_s0 = smov 112  }
 0x14b   : > { %s2656_s1 = smov 104   ;;  %s2657_s16 = smov 56  }
 0x14c   : > { %s2658_s27 = smov 64   ;;  %s2659_s2 = smov 40  }
 0x14d   : > { %v2479_v9 = vld [vmem:[%s3271_s19] sm:$0xff]   ;;  %v2480_v11 = vld [vmem:[%s3271_s19 + $0x8] sm:$0xff]   ;;  %s2660_s19 = smov 48   ;;  %s2661_s4 = smov 8  }
 0x14e   : > { %2272 = vmatpush3.bf16.msra.mxu0 %v2479_v9  ;;  %v2964_v12 = vld [vmem:[#allocation2] sm:$0xf]  ;;  %s2662_s28 = smov 16   ;;  %s2663_s20 = smov 24  }
 0x14f   : > { %2273 = vmatprep.subr.bf16.mxu0 %v2648_v10  ;;  %v936_v13 = vpack.c.bf16 %v2964_v12, %v2964_v12 }
 0x152   : > { %2274 = vmatpush3.bf16.msra.mxu0 %v2480_v11 }
 0x153   : > { %2285 = vmatprep.subr.bf16.mxu0 %v2648_v10 }
 0x155   : > { %2276 = vmatmul.mubr.msk.bf16.vlgmr.msra.gmra.mrb[0].mxu0 %vm960_vm4, %v936_v13 }
 0x156   : > { %2287 = vmatprep.mubr.msk.bf16.mxu0 %vm2649_vm3, %v2648_v10 }
 0x228   : > { %v998_v15 = vpop.f32.mrb[0].mxu0 }
 0x229   : > { %v999_v16 = vadd.f32 %v2182_v14, %v998_v15  ;;  %v2277_v17 = vpop.f32.mrb[1].mxu0 }
 0x22a   : > { %v1001_v18 = vpop.f32.mrb[2].mxu0 }
 0x22b   : > { %v2980_v19 = vpack.c.bf16 %v999_v16, %v999_v16  ;;  %v2278_v20 = vpop.f32.mrb[3].mxu0 }
 0x22d   : > { %1118 = vrot.lane.b32.xlu1 %v2980_v19, %s2650_s21  ;;  %1006 = vrot.lane.b32.xlu0 %v2980_v19, %s2651_s30  ;;  %s3273_s30 = scalar_lea.vmem %s3191_s6, %s2891_s24 }
 0x231   : > { %1230 = vrot.lane.b32.xlu1 %v2980_v19, %s2652_s23  ;;  %1120 = vrot.lane.b32.xlu0 %v2980_v19, %s2653_s22 }
 0x235   : > { %1340 = vrot.lane.b32.xlu1 %v2980_v19, %s2654_s3  ;;  %1228 = vrot.lane.b32.xlu0 %v2980_v19, %s2655_s0  ;;  %s3274_s3 = scalar_lea.vmem %s3192_s7, %s2891_s24 }
 0x239   : > { %1338 = vrot.lane.b32.xlu0 %v2980_v19, %s2656_s1 }
 0x29f   : > { %v1007_v21 = vpop.permute.xlu0 %1006  ;;  %v1119_v24 = vpop.permute.xlu1 %1118 }
 0x2a0   : > { %v1013_v22 = vsel %vm1008_vm5, %v1007_v21, 0 }
 0x2a1   : > { %2280 = vmatpush3.bf16.xpose.msra.mxu1 %v1013_v22 }
 0x2a2   : > { %2291 = vmatprep.subr.bf16.mxu1 %v2648_v10 }
 0x2a3   : > { %v1121_v23 = vpop.permute.xlu0 %1120  ;;  %v1231_v26 = vpop.permute.xlu1 %1230 }
 0x2a4   : > { %v1126_v25 = vsel %vm1008_vm5, %v1121_v23, 0  ;;  %v1236_v27 = vsel %vm1008_vm5, %v1231_v26, 0 }
 0x2a7   : > { %v1341_v28 = vpop.permute.xlu1 %1340  ;;  %v1229_v29 = vpop.permute.xlu0 %1228 }
 0x2a8   : > { %2282 = vmatmul.mubr.msk.bf16.vlgmr.msra.gmra.mrb[0].mxu1 %vm1008_vm5, %v2980_v19  ;;  %v1346_v30 = vsel %vm1008_vm5, %v1341_v28, 0 }
 0x2a9   : > { %2292 = vmatpush3.bf16.xpose.msra.mxu1 %v1126_v25  ;;  %2293 = vmatprep.mubr.msk.bf16.mxu1 %vm2649_vm3, %v2648_v10 }
 0x2aa   : > { %2303 = vmatprep.subr.bf16.mxu1 %v2648_v10 }
 0x2ab   : > { %v1339_v31 = vpop.permute.xlu0 %1338 }
 0x2b0   : > { %2294 = vmatmul.mubr.msk.bf16.vlgmr.msra.gmra.mrb[4].mxu1 %vm1008_vm5, %v1119_v24 }
 0x2b1   : > { %2304 = vmatpush3.bf16.xpose.msra.mxu1 %v1236_v27  ;;  %2305 = vmatprep.mubr.msk.bf16.mxu1 %vm2649_vm3, %v2648_v10 }
 0x2b2   : > { %2315 = vmatprep.subr.bf16.mxu1 %v2648_v10 }
 0x2b8   : > { %2306 = vmatmul.mubr.msk.bf16.vlgmr.msra.gmra.mrb[8].mxu1 %vm1008_vm5, %v1229_v29 }
 0x2b9   : > { %2316 = vmatpush3.bf16.xpose.msra.mxu1 %v1346_v30  ;;  %2317 = vmatprep.mubr.msk.bf16.mxu1 %vm2649_vm3, %v2648_v10 }
 0x2ba   : > { %2327 = vmatprep.subr.bf16.mxu1 %v2648_v10 }
 0x2c0   : > { %2318 = vmatmul.mubr.msk.bf16.vlgmr.msra.gmra.mrb[12].mxu1 %vm1008_vm5, %v1339_v31 }
 0x2c1   : > { %2331 = vmatprep.mubr.msk.bf16.mxu1 %vm2649_vm3, %v2648_v10 }
 0x37b   : > { %v1049_v32 = vpop.f32.mrb[0].mxu1 }
 0x37c   : > { %v2283_v33 = vpop.f32.mrb[1].mxu1  ;;  %v1056_v34 = vsel %vm1055_vm6, %v1049_v32, -inf }
 0x37d   : > { %1057 = vmax.xlane.f32.xlu1 %v1056_v34  ;;  %v1052_v35 = vpop.f32.mrb[2].mxu1 }
 0x37e   : > { %v2284_v36 = vpop.f32.mrb[3].mxu1 }
 0x383   : > { %v1162_v37 = vpop.f32.mrb[4].mxu1 }
 0x384   : > { %v2295_v38 = vpop.f32.mrb[5].mxu1  ;;  %v1168_v39 = vsel %vm1055_vm6, %v1162_v37, -inf }
 0x385   : > { %1169 = vmax.xlane.f32.xlu0 %v1168_v39  ;;  %v1165_v40 = vpop.f32.mrb[6].mxu1 }
 0x386   : > { %v2296_v41 = vpop.f32.mrb[7].mxu1 }
 0x38b   : > { %v1272_v42 = vpop.f32.mrb[8].mxu1 }
 0x38c   : > { %v2307_v43 = vpop.f32.mrb[9].mxu1  ;;  %v1278_v44 = vsel %vm1055_vm6, %v1272_v42, -inf }
 0x38d   : > { %1279 = vmax.xlane.f32.xlu0 %v1278_v44  ;;  %v1275_v45 = vpop.f32.mrb[10].mxu1  ;;  %v2482_v43 = vld [vmem:[%s2909_s17 + $0x8] sm:$0xff]  }
 0x38e   : > { %v2308_v46 = vpop.f32.mrb[11].mxu1 }
 0x393   : > { %v1382_v47 = vpop.f32.mrb[12].mxu1 }
 0x394   : > { %v2319_v48 = vpop.f32.mrb[13].mxu1  ;;  %v1388_v49 = vsel %vm1055_vm6, %v1382_v47, -inf }
 0x395   : > { %1389 = vmax.xlane.f32.xlu1 %v1388_v49  ;;  %v1385_v50 = vpop.f32.mrb[14].mxu1 }
 0x396   : > { %v2320_v51 = vpop.f32.mrb[15].mxu1 }
 0x40a   : > { %v1058_v52 = vpop.xlane.xlu1 %1057 }
 0x40b   : > { %v1059_v53 = vsub.f32 %v1049_v32, %v1058_v52 }
 0x40d   : > { %v1060_v54 = vmul.f32 1.442695, %v1059_v53 }
 0x40f   : > { %2489 = vpow2.f32 %v1060_v54 }
 0x412   : > { %v1170_v55 = vpop.xlane.xlu0 %1169 }
 0x413   : > { %v1171_v56 = vsub.f32 %v1162_v37, %v1170_v55 }
 0x415   : > { %v1172_v57 = vmul.f32 1.442695, %v1171_v56 }
 0x417   : > { %2491 = vpow2.f32 %v1172_v57 }
 0x419   : > { %v2490_v58 = vpop.eup %2489 }
 0x41a   : > { %v1280_v59 = vpop.xlane.xlu0 %1279  ;;  %v1062_v60 = vsel %vm1055_vm6, %v2490_v58, 0.0 }
 0x41b   : > { %v1281_v61 = vsub.f32 %v1272_v42, %v1280_v59  ;;  %1063 = vadd.xlane.f32.xlu0 %v1062_v60  ;;  %v2481_v42 = vld [vmem:[%s2909_s17] sm:$0xff]  }
 0x41c   : > { %2328 = vmatpush3.bf16.msra.mxu1 %v2481_v42  ;;  %v2194_v59 = vld [vmem:[%s3273_s30] ss:$0 sm:$0xff]  ;;  %s3278_s30 = sld [smem:[#allocation11_spill]] }
 0x41d   : > { %v1282_v62 = vmul.f32 1.442695, %v1281_v61  ;;  %2329 = vmatprep.subr.bf16.mxu1 %v2648_v10 }
 0x41f   : > { %2493 = vpow2.f32 %v1282_v62 }
 0x420   : > { %2330 = vmatpush3.bf16.msra.mxu1 %v2482_v43 }
 0x421   : > { %v2492_v63 = vpop.eup %2491  ;;  %2343 = vmatprep.subr.bf16.mxu1 %v2648_v10 }
 0x422   : > { %v1174_v0 = vsel %vm1055_vm6, %v2492_v63, 0.0  ;;  %v1390_v3 = vpop.xlane.xlu1 %1389  ;;  %p2212_p13 = scmp.ne.s32.totalorder %s3278_s30, 1 }
 0x423   : > { %1175 = vadd.xlane.f32.xlu1 %v1174_v0  ;;  %v1391_v4 = vsub.f32 %v1382_v47, %v1390_v3  ;;  %vm2665_vm13 = vmmov (!%p2212_p13), 0   ;;  %s3280_s1 = sld [smem:[#allocation28_spill]] (!%p2212_p13)  ;;  %vm1865_vm14 = vcmask (!%p2212_p13), 1043456   ;;  %vm2667_vm15 = vmmov (!%p2212_p13), 1   ;;  %s3283_s21 = sld [smem:[#allocation31_spill]] (!%p2212_p13) }
 0x424   : > { %vm2372_vm0 = vmpackc.low (!%p2212_p13), %vm1865_vm14, %vm2667_vm15  ;;  %vm1861_vm1 = vcmask (!%p2212_p13), 97280   ;;  %vm1939_vm2 = vcmask (!%p2212_p13), 19456  }
 0x425   : > { %v1392_v5 = vmul.f32 1.442695, %v1391_v4 }
 0x427   : > { %2495 = vpow2.f32 %v1392_v5 }
 0x429   : > { %v2494_v1 = vpop.eup %2493 }
 0x42a   : > { %v1284_v2 = vsel %vm1055_vm6, %v2494_v1, 0.0 }
 0x42b   : > { %1285 = vadd.xlane.f32.xlu0 %v1284_v2 }
 0x431   : > { %v2496_v6 = vpop.eup %2495 }
 0x432   : > { %v1394_v7 = vsel %vm1055_vm6, %v2496_v6, 0.0 }
 0x434   : > { %1180 = vrot.lane.b32.xlu1 %v2980_v19, %s2657_s16  ;;  %s3275_s16 = scalar_lea.vmem %s3193_s8, %s2891_s24 }
 0x441   : > { %1068 = vrot.lane.b32.xlu0 %v2980_v19, %s2658_s27  ;;  %s3281_s27 = sld [smem:[#allocation29_spill]] (!%p2212_p13) }
 0x445   : > { %1400 = vrot.lane.b32.xlu0 %v2980_v19, %s2659_s2  ;;  %s3276_s2 = scalar_lea.vmem %s3195_s10, %s2891_s24 }
 0x458   : > { %1395 = vadd.xlane.f32.xlu1 %v1394_v7 }
 0x469   : > { %1290 = vrot.lane.b32.xlu1 %v2980_v19, %s2660_s19  ;;  %s3282_s19 = sld [smem:[#allocation32_spill]] (!%p2212_p13) }
 0x4a8   : > { %v1064_v8 = vpop.xlane.xlu0 %1063 }
 0x4a9   : > { %2497 = vrcp.f32 %v1064_v8  ;;  %v2483_v8 = vld [vmem:[%s2926_s26] sm:$0xff]  }
 0x4b0   : > { %v1176_v9 = vpop.xlane.xlu1 %1175 }
 0x4b1   : > { %2499 = vrcp.f32 %v1176_v9  ;;  %v2484_v9 = vld [vmem:[%s2926_s26 + $0x8] sm:$0xff]  }
 0x4b3   : > { %v2498_v11 = vpop.eup %2497 }
 0x4b4   : > { %v1066_v14 = vmul.f32 %v2498_v11, %v2490_v58  ;;  %v1181_v17 = vpop.permute.xlu1 %1180 }
 0x4b5   : > { %v1186_v19 = vsel %vm1074_vm7, %v1181_v17, 0  ;;  %v2199_v17 = vld [vmem:[%s3275_s16] ss:$0 sm:$0xff] }
 0x4b6   : > { %v1067_v18 = vpack.c.bf16 %v1066_v14, %v1066_v14 }
 0x4b8   : > { %v1286_v13 = vpop.xlane.xlu0 %1285 }
 0x4b9   : > { %2501 = vrcp.f32 %v1286_v13 }
 0x4bb   : > { %v2500_v20 = vpop.eup %2499 }
 0x4bc   : > { %v1069_v15 = vpop.permute.xlu0 %1068  ;;  %v1178_v21 = vmul.f32 %v2500_v20, %v2492_v63 }
 0x4bd   : > { %v1076_v16 = vsel %vm1074_vm7, %v1069_v15, 0  ;;  %v2198_v15 = vld [vmem:[%s3274_s3] ss:$0 sm:$0xff] }
 0x4be   : > { %2286 = vmatpush3.bf16.msra.mxu0 %v1076_v16  ;;  %v1179_v22 = vpack.c.bf16 %v1178_v21, %v1178_v21  ;;  %v2485_v21 = vld [vmem:[%s2940_s5] sm:$0xff]  }
 0x4bf   : > { %2297 = vmatprep.subr.bf16.mxu0 %v2648_v10 }
 0x4c0   : > { %v1401_v28 = vpop.permute.xlu0 %1400 }
 0x4c1   : > { %2288 = vmatmul.mubr.msk.bf16.vlgmr.msra.gmra.mrb[4].mxu0 %vm1070_vm8, %v1067_v18  ;;  %v1406_v30 = vsel %vm1074_vm7, %v1401_v28, 0 }
 0x4c2   : > { %2298 = vmatpush3.bf16.msra.mxu0 %v1186_v19  ;;  %2299 = vmatprep.mubr.msk.bf16.mxu0 %vm2649_vm3, %v2648_v10 }
 0x4c3   : > { %2309 = vmatprep.subr.bf16.mxu0 %v2648_v10  ;;  %v2502_v23 = vpop.eup %2501 }
 0x4c4   : > { %v1288_v25 = vmul.f32 %v2502_v23, %v2494_v1  ;;  %v2487_v23 = vld [vmem:[%s2940_s5 + $0x10] sm:$0xff]  }
 0x4c6   : > { %v1289_v29 = vpack.c.bf16 %v1288_v25, %v1288_v25  ;;  %v2200_v25 = vld [vmem:[%s3276_s2] ss:$0 sm:$0xff] }
 0x4c9   : > { %2300 = vmatmul.mubr.msk.bf16.vlgmr.msra.gmra.mrb[8].mxu0 %vm1070_vm8, %v1179_v22  ;;  %v2486_v22 = vld [vmem:[%s2940_s5 + $0x8] sm:$0xff]  }
 0x4ca   : > { %2311 = vmatprep.mubr.msk.bf16.mxu0 %vm2649_vm3, %v2648_v10 }
 0x4e5   : > { %v1396_v24 = vpop.xlane.xlu1 %1395 }
 0x4e6   : > { %2503 = vrcp.f32 %v1396_v24  ;;  %v2488_v24 = vld [vmem:[%s2940_s5 + $0x18] sm:$0xff]  }
 0x4e9   : > { %v1291_v26 = vpop.permute.xlu1 %1290 }
 0x4ea   : > { %v1296_v27 = vsel %vm1074_vm7, %v1291_v26, 0 }
 0x4eb   : > { %2310 = vmatpush3.bf16.msra.mxu0 %v1296_v27 }
 0x4ec   : > { %2321 = vmatprep.subr.bf16.mxu0 %v2648_v10 }
 0x4ee   : > { %2312 = vmatmul.mubr.msk.bf16.vlgmr.msra.gmra.mrb[12].mxu0 %vm1070_vm8, %v1289_v29 }
 0x4ef   : > { %2322 = vmatpush3.bf16.msra.mxu0 %v1406_v30  ;;  %2323 = vmatprep.mubr.msk.bf16.mxu0 %vm2649_vm3, %v2648_v10 }
 0x4f0   : > { %v2504_v31 = vpop.eup %2503  ;;  %2335 = vmatprep.subr.bf16.mxu0 %v2648_v10 }
 0x4f1   : > { %v1398_v32 = vmul.f32 %v2504_v31, %v2496_v6 }
 0x4f3   : > { %v1399_v33 = vpack.c.bf16 %v1398_v32, %v1398_v32 }
 0x4f6   : > { %2324 = vmatmul.mubr.msk.bf16.vlgmr.msra.gmra.mrb[16].mxu0 %vm1070_vm8, %v1399_v33 }
 0x4f7   : > { %2339 = vmatprep.mubr.msk.bf16.mxu0 %vm2649_vm3, %v2648_v10  ;;  %2336 = vmatpush3.bf16.msra.mxu0 %v2483_v8 }
 0x4f8   : > { %2337 = vmatprep.subr.bf16.mxu0 %v2648_v10 }
 0x4fb   : > { %2338 = vmatpush3.bf16.msra.mxu0 %v2484_v9 }
 0x594   : > { %v1112_v34 = vpop.f32.mrb[4].mxu0 }
 0x595   : > { %v2289_v35 = vpop.f32.mrb[5].mxu0 }
 0x596   : > { %v1115_v36 = vpop.f32.mrb[6].mxu0 }
 0x597   : > { %v2290_v37 = vpop.f32.mrb[7].mxu0 }
 0x59c   : > { %v1222_v38 = vpop.f32.mrb[8].mxu0 }
 0x59d   : > { %1449 = vrot.lane.b32.xlu1 %v1222_v38, %s2661_s4  ;;  %v2301_v39 = vpop.f32.mrb[9].mxu0  ;;  %s3277_s4 = scalar_lea.vmem %s3197_s12, %s2891_s24  ;;  %s3284_s24 = sld [smem:[#allocation33_spill]] (!%p2212_p13) }
 0x59e   : > { %v1225_v40 = vpop.f32.mrb[10].mxu0 }
 0x59f   : > { %v2302_v41 = vpop.f32.mrb[11].mxu0  ;;  %v2204_v40 = vld [vmem:[%s3277_s4] ss:$0 sm:$0xff] }
 0x5c1   : > { %v1332_v44 = vpop.f32.mrb[12].mxu0 }
 0x5c2   : > { %1453 = vrot.lane.b32.xlu0 %v1332_v44, %s2662_s28  ;;  %v2313_v45 = vpop.f32.mrb[13].mxu0 }
 0x5c3   : > { %v1335_v46 = vpop.f32.mrb[14].mxu0 }
 0x5c4   : > { %v2314_v47 = vpop.f32.mrb[15].mxu0 }
 0x5c9   : > { %v1442_v48 = vpop.f32.mrb[16].mxu0 }
 0x5ca   : > { %1457 = vrot.lane.b32.xlu1 %v1442_v48, %s2663_s20  ;;  %v2325_v49 = vpop.f32.mrb[17].mxu0 }
 0x5cb   : > { %v1445_v50 = vpop.f32.mrb[18].mxu0 }
 0x5cc   : > { %v2326_v51 = vpop.f32.mrb[19].mxu0 }
 0x60f   : > { %v1450_v52 = vpop.permute.xlu1 %1449 }
 0x610   : > { %v1460_v54 = vsel %vm1008_vm5, %v1112_v34, %v1450_v52 }
 0x634   : > { %v1454_v53 = vpop.permute.xlu0 %1453 }
 0x635   : > { %v1462_v55 = vsel %vm1461_vm9, %v1460_v54, %v1454_v53 }
 0x63c   : > { %v1458_v56 = vpop.permute.xlu1 %1457 }
 0x63d   : > { %v1464_v57 = vsel %vm1463_vm10, %v1462_v55, %v1458_v56 }
 0x63e   : > { %v1465_v58 = vpack.c.bf16 %v1464_v57, %v1464_v57  ;;  %v2210_v57 = vld [vmem:[%s864_s29] ss:$0 sm:$0xff] }
 0x640   : > { %2332 = vmatmul.mubr.msk.bf16.vlgmr.msra.gmra.mrb[16].mxu1 %vm960_vm4, %v1465_v58 }
 0x641   : > { %2351 = vmatprep.mubr.msk.bf16.mxu1 %vm2649_vm3, %v2648_v10  ;;  %2344 = vmatpush3.bf16.msra.mxu1 %v2485_v21  ;;  %vm1949_vm3 = vcmask (!%p2212_p13), 16384  }
 0x642   : > { %2345 = vmatprep.subr.bf16.mxu1 %v2648_v10 }
 0x645   : > { %2346 = vmatpush3.bf16.msra.mxu1 %v2486_v22 }
 0x646   : > { %2347 = vmatprep.subr.bf16.mxu1 %v2648_v10 }
 0x649   : > { %2348 = vmatpush3.bf16.msra.mxu1 %v2487_v23 }
 0x64a   : > { %2349 = vmatprep.subr.bf16.mxu1 %v2648_v10 }
 0x64d   : > { %2350 = vmatpush3.bf16.msra.mxu1 %v2488_v24 }
 0x713   : > { %v1526_v60 = vpop.f32.mrb[16].mxu1 }
 0x714   : > { %v1527_v61 = vadd.f32 %v2194_v59, %v1526_v60  ;;  %v2333_v62 = vpop.f32.mrb[17].mxu1  ;;  %v2211_v59 = vld [vmem:[%s867_s18] ss:$0 sm:$0xff]  ;;  %s3279_s18 = sld [smem:[#allocation30_spill]] (!%p2212_p13) }
 0x715   : > { %v1529_v63 = vpop.f32.mrb[18].mxu1 }
 0x716   : > { %v2334_v0 = vpop.f32.mrb[19].mxu1  ;;  %v1532_v1 = vadd.f32 %v1527_v61, %v2964_v12 }
 0x718   : > { %v1536_v2 = vsel %vm1535_vm11, %v1532_v1, 0.0 }
 0x719   : > { %1537 = vadd.xlane.f32.xlu0 %v1536_v2 }
 0x7a6   : > { %v1538_v3 = vpop.xlane.xlu0 %1537 }
 0x7a7   : > { %v1540_v4 = vmul.f32 0.03125, %v1538_v3 }
 0x7a9   : > { %v1541_v5 = vsub.f32 %v1532_v1, %v1540_v4  ;;  %v2511_v4 = vld [vmem:[%s3279_s18] sm:$0xff] (!%p2212_p13)  }
 0x7ab   : > { %v1542_v6 = vmul.f32 %v1541_v5, %v1541_v5 }
 0x7ad   : > { %v1543_v7 = vsel %vm1535_vm11, %v1542_v6, 0.0  ;;  %v2512_v6 = vld [vmem:[%s3279_s18 + $0x8] sm:$0xff] (!%p2212_p13)  }
 0x7ae   : > { %1544 = vadd.xlane.f32.xlu1 %v1543_v7  ;;  %v2666_v7 = vmov (!%p2212_p13), 0.0|0.0  }
 0x7af   : > { %2370 = vmatprep.subr.bf16.mxu1 (!%p2212_p13), %v2666_v7 }
 0x83b   : > { %v1545_v12 = vpop.xlane.xlu1 %1544 }
 0x83c   : > { %v1546_v11 = vmul.f32 0.03125, %v1545_v12 }
 0x83e   : > { %v1547_v13 = vadd.f32 1e-05, %v1546_v11 }
 0x840   : > { %2505 = vrsqrt.f32 %v1547_v13  ;;  %v2213_v13 = vld [vmem:[%s3280_s1] ss:$0 sm:$0xff] (!%p2212_p13) }
 0x84a   : > { %v2506_v14 = vpop.eup %2505 }
 0x84b   : > { %v1549_v16 = vmul.f32 %v2506_v14, %v1541_v5  ;;  %v2664_v5 = vmov (!%p2212_p13), 0.0  }
 0x84c   : > { %2355 = vmatprep.subr.bf16.mxu0 (!%p2212_p13), %v2664_v5 }
 0x84d   : > { %v1556_v18 = vmul.f32 %v2198_v15, %v1549_v16  ;;  %v2214_v15 = vld [vmem:[%s3281_s27] ss:$0 sm:$0xff] (!%p2212_p13) }
 0x84f   : > { %v1563_v20 = vadd.f32 %v2199_v17, %v1556_v18 }
 0x851   : > { %v1564_v19 = vpack.c.bf16 %v1563_v20, %v1563_v20 }
 0x853   : > { %2340 = vmatmul.mubr.msk.bf16.vlgmr.msra.gmra.mrb[20].mxu0 %vm960_vm4, %v1564_v19 }
 0x854   : > { %2359 = vmatprep.mubr.msk.bf16.mxu0 (!%p2212_p13), %vm2665_vm13, %v2664_v5  ;;  %2356 = vmatpush3.bf16.msra.mxu0 (!%p2212_p13), %v2511_v4 }
 0x855   : > { %2357 = vmatprep.subr.bf16.mxu0 (!%p2212_p13), %v2664_v5 }
 0x858   : > { %2358 = vmatpush3.bf16.msra.mxu0 (!%p2212_p13), %v2512_v6 }
 0x926   : > { %v1625_v26 = vpop.f32.mrb[20].mxu0 }
 0x927   : > { %v1626_v27 = vadd.f32 %v2200_v25, %v1625_v26  ;;  %v2341_v28 = vpop.f32.mrb[21].mxu0 }
 0x928   : > { %v1628_v29 = vpop.f32.mrb[22].mxu0  ;;  %v1859_v28 = vld [vmem:[%s3282_s19] sm:$0xff] (!%p2212_p13) }
 0x929   : > { %v1632_v30 = vmul.f32 0.044715, %v1626_v27  ;;  %v2342_v31 = vpop.f32.mrb[23].mxu0  ;;  %v1631_v10 = vmul.f32 0.5, %v1626_v27  ;;  %v1860_v29 = vld [vmem:[%s3282_s19 + $0x8] sm:$0xf] (!%p2212_p13) }
 0x92a   : > { %v1857_v31 = vld [vmem:[%s3283_s21] sm:$0xf] (!%p2212_p13) }
 0x92b   : > { %v1633_v32 = vmul.f32 %v1632_v30, %v1626_v27  ;;  %v2371_v30 = vpack.c.bf16 (!%p2212_p13), %v1860_v29, %v1859_v28 }
 0x92d   : > { %v1634_v33 = vmul.f32 %v1633_v32, %v1626_v27 }
 0x92f   : > { %v1635_v34 = vadd.f32 %v1634_v33, %v1626_v27 }
 0x931   : > { %v1636_v35 = vmul.f32 0.7978846, %v1635_v34 }
 0x933   : > { %2507 = vtanh.f32 %v1636_v35 }
 0x93d   : > { %v2508_v36 = vpop.eup %2507 }
 0x93e   : > { %v1638_v37 = vadd.f32 1.0, %v2508_v36 }
 0x940   : > { %v1639_v38 = vmul.f32 %v1638_v37, %v1631_v10 }
 0x942   : > { %v1640_v39 = vpack.c.bf16 %v1639_v38, %v1639_v38 }
 0x944   : > { %2352 = vmatmul.mubr.msk.bf16.vlgmr.msra.gmra.mrb[20].mxu1 %vm1680_vm12, %v1640_v39 }
 0x945   : > { %2367 = vmatprep.mubr.msk.f32.mxu1 (!%p2212_p13), %vm2665_vm13, %v2664_v5  ;;  %2373 = vmatpush3.bf16.msk.msra.mxu1 (!%p2212_p13), %vm2372_vm0, %v2371_v30 }
 0xa17   : > { %v1718_v41 = vpop.f32.mrb[20].mxu1 }
 0xa18   : > { %v1719_v42 = vadd.f32 %v2204_v40, %v1718_v41  ;;  %v2353_v43 = vpop.f32.mrb[21].mxu1 }
 0xa19   : > { %v1721_v44 = vpop.f32.mrb[22].mxu1 }
 0xa1a   : > { %v2354_v45 = vpop.f32.mrb[23].mxu1  ;;  %v1724_v46 = vadd.f32 %v1719_v42, %v1563_v20  ;;  %v1947_v44 = vld [vmem:[%s3284_s24] sm:$0x1] (!%p2212_p13) }
 0xa1c   : > { %v1727_v47 = vsel %vm1535_vm11, %v1724_v46, 0.0 }
 0xa1d   : > { %1728 = vadd.xlane.f32.xlu0 %v1727_v47 }
 0xaaa   : > { %v1729_v48 = vpop.xlane.xlu0 %1728 }
 0xaab   : > { %v1730_v49 = vmul.f32 0.03125, %v1729_v48 }
 0xaad   : > { %v1731_v50 = vsub.f32 %v1724_v46, %v1730_v49 }
 0xaaf   : > { %v1732_v51 = vmul.f32 %v1731_v50, %v1731_v50 }
 0xab1   : > { %v1733_v52 = vsel %vm1535_vm11, %v1732_v51, 0.0 }
 0xab2   : > { %1734 = vadd.xlane.f32.xlu0 %v1733_v52 }
 0xb3f   : > { %v1735_v53 = vpop.xlane.xlu0 %1734 }
 0xb40   : > { %v1736_v54 = vmul.f32 0.03125, %v1735_v53 }
 0xb42   : > { %v1737_v55 = vadd.f32 1e-05, %v1736_v54 }
 0xb44   : > { %2509 = vrsqrt.f32 %v1737_v55 }
 0xb4e   : > { %v2510_v56 = vpop.eup %2509 }
 0xb4f   : > { %v1739_v58 = vmul.f32 %v2510_v56, %v1731_v50  ;;  %1758 = sbr.rel (%p2212_p13) target bundleno = 3683 (0xe63), region = 116 }
 0xb51   : > { %v1746_v60 = vmul.f32 %v2210_v57, %v1739_v58 }
 0xb53   : > { %v1753_v61 = vadd.f32 %v2211_v59, %v1746_v60 }
 0xb55   : > { %1754 = vst.msk [vmem:[#allocation2] sm:$0xf] %vm1535_vm11, %v1753_v61  ;;  %v1761_v62 = vsel (!%p2212_p13), %vm1535_vm11, %v1753_v61, 0.0 }
 0xb56   : > { %1762 = vadd.xlane.f32.xlu0 %v1761_v62 }
 0xbe3   : > { %v1763_v63 = vpop.xlane.xlu0 %1762 }
 0xbe4   : > { %v1764_v0 = vmul.f32 0.03125, %v1763_v63 }
 0xbe6   : > { %v1765_v1 = vsub.f32 %v1753_v61, %v1764_v0 }
 0xbe8   : > { %v1766_v2 = vmul.f32 %v1765_v1, %v1765_v1 }
 0xbea   : > { %v1767_v3 = vsel %vm1535_vm11, %v1766_v2, 0.0 }
 0xbeb   : > { %1768 = vadd.xlane.f32.xlu0 %v1767_v3 }
 0xc78   : > { %v1769_v8 = vpop.xlane.xlu0 %1768 }
 0xc79   : > { %v1770_v9 = vmul.f32 0.03125, %v1769_v8 }
 0xc7b   : > { %v1771_v12 = vadd.f32 1e-05, %v1770_v9 }
 0xc7d   : > { %2513 = vrsqrt.f32 %v1771_v12 }
 0xc87   : > { %v2514_v11 = vpop.eup %2513 }
 0xc88   : > { %v1773_v14 = vmul.f32 %v2514_v11, %v1765_v1 }
 0xc8a   : > { %v1780_v16 = vmul.f32 %v2213_v13, %v1773_v14 }
 0xc8c   : > { %v1787_v17 = vadd.f32 %v2214_v15, %v1780_v16 }
 0xc8e   : > { %v1789_v18 = vmul.f32 0.044715, %v1787_v17  ;;  %v1788_v24 = vmul.f32 0.5, %v1787_v17 }
 0xc90   : > { %v1790_v20 = vmul.f32 %v1789_v18, %v1787_v17 }
 0xc92   : > { %v1791_v19 = vmul.f32 %v1790_v20, %v1787_v17 }
 0xc94   : > { %v1792_v21 = vadd.f32 %v1791_v19, %v1787_v17 }
 0xc96   : > { %v1793_v22 = vmul.f32 0.7978846, %v1792_v21 }
 0xc98   : > { %2515 = vtanh.f32 %v1793_v22 }
 0xca2   : > { %v2516_v23 = vpop.eup %2515 }
 0xca3   : > { %v1795_v25 = vadd.f32 1.0, %v2516_v23 }
 0xca5   : > { %v1796_v26 = vmul.f32 %v1795_v25, %v1788_v24 }
 0xca7   : > { %v1797_v27 = vpack.c.bf16 %v1796_v26, %v1796_v26 }
 0xca9   : > { %2360 = vmatmul.mubr.msk.bf16.vlgmr.msra.gmra.mrb[0].mxu0 %vm960_vm4, %v1797_v27 }
 0xd7c   : > { %v1851_v32 = vpop.f32.mrb[0].mxu0 }
 0xd7d   : > { %v1858_v33 = vmul.f32 %v1857_v31, %v1851_v32  ;;  %v2361_v34 = vpop.f32.mrb[1].mxu0 }
 0xd7e   : > { %v1854_v35 = vpop.f32.mrb[2].mxu0 }
 0xd7f   : > { %v2362_v36 = vpop.f32.mrb[3].mxu0  ;;  %2368 = vmatmul.mubr.msk.f32.vlgmr.msra.gmra.mrb[0].mxu1 %vm1861_vm1, %v1858_v33 }
 0xe52   : > { %v1935_v10 = vpop.f32.mrb[0].mxu1 }
 0xe53   : > { %v1940_v37 = vsel %vm1939_vm2, %v1935_v10, 0.0  ;;  %v2369_v38 = vpop.f32.mrb[1].mxu1 }
 0xe54   : > { %v1941_v39 = vrot.slane %v1940_v37, 4 }
 0xe56   : > { %v1942_v40 = vadd.f32 %v1941_v39, %v1940_v37 }
 0xe58   : > { %v1943_v41 = vrot.slane %v1942_v40, 2 }
 0xe5a   : > { %v1944_v42 = vadd.f32 %v1943_v41, %v1942_v40 }
 0xe5c   : > { %v1945_v43 = vrot.slane %v1944_v42, 1 }
 0xe5e   : > { %v1946_v45 = vadd.f32 %v1945_v43, %v1944_v42 }
 0xe60   : > { %v1948_v46 = vadd.f32 %v1947_v44, %v1946_v45 }
 0xe62   : > { %1950 = vst.msk [vmem:[%s2952_s15] sm:$0x1] %vm1949_vm3, %v1948_v46 }
 0xe63 PF: > { %s3285_s23 = sld [smem:[#allocation12_spill]]  ;;  %s3286_s22 = sld [smem:[#allocation17_spill]] }
 0xe64   : > { %s3287_s16 = sld [smem:[#allocation34_spill]]  ;;  %s1964_s27 = sshll.u32 %s2952_s15, 4  ;;  %s1965_s27 = int_to_ptr.vmem [resolvable:$true] %s1964_s27 }
 0xe65   : > { %s3288_s2 = sand.u32 1, %s2619_s25   ;;  %s2545_s4 = scalar_lea.vmem %s1965_s27, 16 }
 0xe66   : > { %s1952_s5 = scalar_lea.sflag [#allocation5], %s3288_s2  ;;  %p2546_p0 = scmp.ne.s32.totalorder %s1965_s27, %s2545_s4 }
 0xe67   : > { %s2668_s28 = smov [#allocation6]  }
 0xe68   : > { %s2549_s20 = sshll.u32 %s2668_s28, 4  ;;  %s2550_s20 = int_to_ptr.vmem [resolvable:$false] %s2549_s20 }
 0xe69   : > { %s2220_s3 = sshll.u32 %s3285_s23, 4  ;;  %p3289_p2 = scmp.ne.s32.totalorder %s3286_s22, 0 }
 0xe6a   : > { %s3135_s26 = scalar_lea.hbm %s3287_s16, %s2220_s3  ;;  %s2551_s17 = scalar_lea.vmem %s2550_s20, 32 }
 0xe6b   : > { %p2547_p5 = pnand %p2546_p0, %p3289_p2  ;;  %p2552_p7 = scmp.lt.s32.totalorder %s1965_s27, %s2550_s20 }
 0xe6c   : > { %p2553_p8 = scmp.lt.s32.totalorder %s2551_s17, %s2545_s4 }
 0xe6d   : > { %p2548_p6 = pneg %p2547_p5 }
 0xe6e   : > { %p2554_p11 = por %p2553_p8, %p2552_p7 }
 0xe70   : > { %p2555_p12 = pnand %p2554_p11, %p2548_p6 }
 0xe72   : > { %2558 = shalt.err (!%p2555_p12)
}
 0xe73   : > { %s2559_s15 = scalar_lea.hbm %s3135_s26, 16  ;;  %s2563_s29 = scalar_lea.hbm %s3287_s16, 32 }
 0xe74   : > { %p2560_p1 = scmp.ne.s32.totalorder %s3135_s26, %s2559_s15  ;;  %p2564_p9 = scmp.lt.u32.totalorder %s3135_s26, %s3287_s16 }
 0xe75   : > { %p2565_p10 = scmp.lt.u32.totalorder %s2563_s29, %s2559_s15  ;;  %p2567_p0 = scmp.lt.u32.totalorder %s2559_s15, %s3135_s26 }
 0xe76   : > { %p2561_p4 = pnand %p2560_p1, %p3289_p2 }
 0xe77   : > { %p2566_p13 = por %p2565_p10, %p2564_p9 }
 0xe78   : > { %p2562_p3 = pneg %p2561_p4 }
 0xe79   : > { %p2568_p5 = por %p2567_p0, %p2566_p13 }
 0xe7b   : > { %p2569_p6 = pnand %p2568_p5, %p2562_p3 }
 0xe7d   : > { %2572 = shalt.err (!%p2569_p6)
}
 0xe7e   : > { %2378 = dma.vmem_to_hbm [thread:$0]  (%p3289_p2), %s1965_s27, 16, %s3135_s26, %s1952_s5  }
 0xe7f PF: > { %s3290_s3 = sld [smem:[#allocation15_spill]]  ;;  %s3291_s0 = sld [smem:[#allocation9_spill]] }
 0xe80   : > { %s3292_s1 = sld [smem:[#allocation19_spill]] }
 0xe85   : > { %p2390_p7 = scmp.ge.s32.totalorder %s3290_s3, 2  ;;  %s1976_s2 = sand.u32 1, %s3291_s0  }
 0xe86   : > { %p3293_p8 = scmp.ne.s32.totalorder %s3292_s1, 0  ;;  %s1977_s4 = scalar_lea.sflag [#allocation5], %s1976_s2 }
 0xe88   : > { %p2385_p11 = pnand %p2390_p7, %p3293_p8 }
 0xe8a   : > { %2610 = dma.done.wait (!%p2385_p11), %s1977_s4, 16  }
 0xe8b   : > { %2612 = vsyncadd (!%p2385_p11), %s1977_s4, 4294967280  ;;  %s35_s0 = sadd.s32 1, %s3290_s3   ;;  %s3294_s28 = sld [smem:[#allocation10_spill]] }
 0xe8c   : > { %p32_p12 = scmp.ge.s32.totalorder %s35_s0, 6   ;;  %s3295_s26 = sld [smem:[#allocation20_spill]] }
 0xe8d   : > { %s3296_s27 = sld [smem:[#allocation13_spill]]  ;;  %s3297_s3 = sld [smem:[#allocation14_spill]] }
 0xe8e   : > { %s3298_s22 = sld [smem:[#allocation16_spill]]  ;;  %s3299_s29 = sld [smem:[#allocation18_spill]] }
 0xe8f   : > { %s3300_s2 = smov %s2619_s25  ;;  %34 = sbr.rel (!%p32_p12) target bundleno = 20 (0x14), region = 188 }
 0xe91   : > { %s3301_s25 = smov %s3294_s28 }
 0xe94   : > { %s3302_s28 = smov %s3298_s22 }
 0xe96   :  { %1981 = vsyncpa [#allocation4], 1 }
 0xe97   :  { %1983 = vsyncpa [#allocation4 + $0x1], 1 }
 0xe98   :  { %1984 = vsyncpa [#allocation5], 1 }
 0xe99   :  { %1986 = vsyncpa [#allocation5 + $0x1], 1 }

</bundles_post_ra>
